<compile_context>
chip_gen: v7x
topology: tpu7x:2x2x1
jax: 0.10.0
libtpu: 0.0.40
codegen_flags: <defaults>
</compile_context>

<pallas_src>
import math

import jax
import jax.numpy as jnp
from jax.experimental import pallas as pl
from jax.experimental.pallas import tpu as pltpu


def _round_up(x, m):
    return ((x + m - 1) // m) * m


def _pad_2d(x, rows, cols):
    pr, pc = rows - x.shape[0], cols - x.shape[1]
    if pr == 0 and pc == 0:
        return x
    return jnp.pad(x, ((0, pr), (0, pc)))


# --------------------------- feature transform ------------------------------
def _transform_kernel(x_ref, w_ref, o_ref):
    # x: (tile_n, input_dim) f32, w: (input_dim, output_dim) f32 (resident).
    # One wide matmul replaces num_support narrow ones (better MXU N fill).
    o_ref[...] = jnp.dot(
        x_ref[...], w_ref[...], preferred_element_type=jnp.float32
    ).astype(o_ref.dtype)


def _feature_transform(x, w_all, out_dtype, row_block=256):
    n, d = x.shape
    out_dim = w_all.shape[1]
    tile_n = min(row_block, _round_up(n, 8))
    n_p = _round_up(n, tile_n)
    x_p = _pad_2d(x, n_p, d)

    out = pl.pallas_call(
        _transform_kernel,
        out_shape=jax.ShapeDtypeStruct((n_p, out_dim), out_dtype),
        grid_spec=pltpu.PrefetchScalarGridSpec(
            num_scalar_prefetch=0,
            grid=(n_p // tile_n,),
            in_specs=[
                pl.BlockSpec((tile_n, d), lambda i: (i, 0)),
                pl.BlockSpec((d, out_dim), lambda i: (0, 0)),
            ],
            out_specs=pl.BlockSpec((tile_n, out_dim), lambda i: (i, 0)),
        ),
        compiler_params=pltpu.CompilerParams(
            dimension_semantics=("parallel",),
            vmem_limit_bytes=32 * 1024 * 1024,
        ),
    )(x_p, w_all)
    return out[:n]


# ------------------------------ aggregation ---------------------------------
def _make_agg_kernel(num_support, out_per):
    def agg_kernel(sup_ref, tmp_ref, bias_ref, out_ref, acc_ref):
        # sup_ref:  (S, tile_r, tile_c) bf16 -- all supports for this tile
        # tmp_ref:  (tile_c, S*out_per) bf16 -- transformed "other side" feats
        # bias_ref: (1, S*out_per) f32       -- zeros when use_bias=False
        # out_ref:  (tile_r, S*out_per)      -- cat([h_0..h_{S-1}], dim=1)
        # acc_ref:  (tile_r, S*out_per) f32 scratch, persists across c steps
        c = pl.program_id(1)

        @pl.when(c == 0)
        def _init():
            acc_ref[...] = jnp.zeros_like(acc_ref)

        tmp = tmp_ref[...]
        for i in range(num_support):          # static, small (num_support)
            lo = i * out_per
            acc_ref[:, lo:lo + out_per] += jnp.dot(
                sup_ref[i], tmp[:, lo:lo + out_per],
                preferred_element_type=jnp.float32)

        @pl.when(c == pl.num_programs(1) - 1)
        def _finish():
            # ReLU first, then bias -- matches the torch module's ordering;
            # full-width (lane-dense) slab store of the cat result.
            out = jnp.maximum(acc_ref[...], 0.0) + bias_ref[...]
            out_ref[...] = out.astype(out_ref.dtype)

    return agg_kernel


def _aggregate(supports, tmp, bias_row, out_dtype, *, row_block=256,
               col_block=512):
    s, rows, cols = supports.shape
    out_dim = tmp.shape[1]
    out_per = out_dim // s

    tile_r = min(row_block, _round_up(rows, 8))
    rows_p = _round_up(rows, tile_r)
    tile_c = min(col_block, _round_up(cols, 128))
    cols_p = _round_up(cols, tile_c)

    sup_p = supports
    if rows_p != rows or cols_p != cols:
        sup_p = jnp.pad(supports,
                        ((0, 0), (0, rows_p - rows), (0, cols_p - cols)))
    tmp_p = _pad_2d(tmp, cols_p, out_dim)

    grid = (rows_p // tile_r, cols_p // tile_c)

    flops = 2 * s * rows_p * cols_p * out_per + 2 * rows_p * out_dim
    bytes_accessed = (sup_p.size * sup_p.dtype.itemsize
                      + grid[0] * tmp_p.size * tmp_p.dtype.itemsize
                      + rows_p * out_dim * jnp.dtype(out_dtype).itemsize
                      + bias_row.size * 4)

    out = pl.pallas_call(
        _make_agg_kernel(s, out_per),
        out_shape=jax.ShapeDtypeStruct((rows_p, out_dim), out_dtype),
        grid_spec=pltpu.PrefetchScalarGridSpec(
            num_scalar_prefetch=0,
            grid=grid,
            in_specs=[
                pl.BlockSpec((s, tile_r, tile_c), lambda r, c: (0, r, c)),
                pl.BlockSpec((tile_c, out_dim), lambda r, c: (c, 0)),
                pl.BlockSpec((1, out_dim), lambda r, c: (0, 0)),
            ],
            out_specs=pl.BlockSpec((tile_r, out_dim), lambda r, c: (r, 0)),
            scratch_shapes=[pltpu.VMEM((tile_r, out_dim), jnp.float32)],
        ),
        compiler_params=pltpu.CompilerParams(
            dimension_semantics=("parallel", "arbitrary"),
            vmem_limit_bytes=32 * 1024 * 1024,
        ),
        cost_estimate=pl.CostEstimate(
            flops=int(flops), transcendentals=0,
            bytes_accessed=int(bytes_accessed)),
    )(sup_p, tmp_p, bias_row)
    return out[:rows]


# ------------------------------- top level -----------------------------------
def stack_gcn_encoder(user_supports, item_supports, user_inputs, item_inputs,
                      weight, bias=None, bias_item=None, *,
                      support_dtype=jnp.bfloat16, row_block=256,
                      col_block=512):
    """Pallas implementation of StackGCNEncoder.forward.

    user_supports: (S, num_users, num_items) dense f32
    item_supports: (S, num_items, num_users) dense f32
    user_inputs:   (num_users, input_dim) f32
    item_inputs:   (num_items, input_dim) f32
    weight:        (S, input_dim, output_dim // S) f32
    """
    num_support, input_dim, out_per = weight.shape
    output_dim = num_support * out_per

    # weight[i] becomes column block i of one wide (D, output_dim) matrix, so
    # torch.cat(..., dim=1) falls out of a single matmul per side.
    w_all = jnp.transpose(weight, (1, 0, 2)).reshape(input_dim, output_dim)

    # tmp_u = user_inputs @ W, tmp_v = item_inputs @ W  (stored bf16; the
    # aggregation stage is HBM-bound, accumulation stays f32 in-kernel).
    tmp_u = _feature_transform(user_inputs.astype(jnp.float32), w_all,
                               jnp.bfloat16, row_block)
    tmp_v = _feature_transform(item_inputs.astype(jnp.float32), w_all,
                               jnp.bfloat16, row_block)

    zeros = jnp.zeros((output_dim,), jnp.float32)
    bias_u = (bias if bias is not None else zeros).astype(
        jnp.float32).reshape(1, output_dim)
    bias_i = (bias_item if bias_item is not None else zeros).astype(
        jnp.float32).reshape(1, output_dim)

    user_sup = user_supports.astype(support_dtype)
    item_sup = item_supports.astype(support_dtype)

    user_out = _aggregate(user_sup, tmp_v, bias_u, jnp.float32,
                          row_block=row_block, col_block=col_block)
    item_out = _aggregate(item_sup, tmp_u, bias_i, jnp.float32,
                          row_block=row_block, col_block=col_block)
    return user_out, item_out


# ------------------------------- validation ----------------------------------
def _reference(user_supports, item_supports, user_inputs, item_inputs, weight,
               bias=None, bias_item=None):
    """Plain-JAX f32 re-implementation of the torch forward."""
    u_hidden, i_hidden = [], []
    for i in range(weight.shape[0]):
        tmp_u = user_inputs @ weight[i]
        tmp_v = item_inputs @ weight[i]
        u_hidden.append(user_supports[i] @ tmp_v)
        i_hidden.append(item_supports[i] @ tmp_u)
    u = jnp.maximum(jnp.concatenate(u_hidden, axis=1), 0.0)
    v = jnp.maximum(jnp.concatenate(i_hidden, axis=1), 0.0)
    if bias is not None:
        u = u + bias
        v = v + bias_item
    return u, v


if __name__ == "__main__":
    num_support = 5
    input_dim = 32
    output_dim = 40          # out_per = 8
    num_users = 64
    num_items = 48
    out_per = output_dim // num_support

    key = jax.random.PRNGKey(0)
    k_w, k_us, k_is, k_ui, k_ii, k_b, k_bi = jax.random.split(key, 7)

    # kaiming-uniform-like init for weight
    fan_in = input_dim * out_per
    bound = math.sqrt(2.0) * math.sqrt(3.0 / fan_in)
    weight = jax.random.uniform(
        k_w, (num_support, input_dim, out_per),
        minval=-bound, maxval=bound, dtype=jnp.float32)

    # Dense stand-ins for the normalized sparse adjacency matrices
    user_supports = jax.random.uniform(
        k_us, (num_support, num_users, num_items), dtype=jnp.float32) / num_items
    item_supports = jax.random.uniform(
        k_is, (num_support, num_items, num_users), dtype=jnp.float32) / num_users

    user_inputs = jax.random.normal(k_ui, (num_users, input_dim), jnp.float32)
    item_inputs = jax.random.normal(k_ii, (num_items, input_dim), jnp.float32)
    bias = 0.05 * jax.random.normal(k_b, (output_dim,), jnp.float32)
    bias_item = 0.05 * jax.random.normal(k_bi, (output_dim,), jnp.float32)

    fwd = jax.jit(stack_gcn_encoder)
    user_out, item_out = fwd(user_supports, item_supports, user_inputs,
                             item_inputs, weight, bias=bias,
                             bias_item=bias_item)
    jax.block_until_ready((user_out, item_out))

    u_ref, i_ref = _reference(user_supports, item_supports, user_inputs,
                              item_inputs, weight, bias, bias_item)
    assert user_out.shape == (num_users, output_dim)
    assert item_out.shape == (num_items, output_dim)
    # bf16 supports/tmp -> loosened (but still meaningful) tolerance vs f32 ref
    assert jnp.allclose(user_out, u_ref, atol=1e-2, rtol=1e-2), \
        float(jnp.max(jnp.abs(user_out - u_ref)))
    assert jnp.allclose(item_out, i_ref, atol=1e-2, rtol=1e-2), \
        float(jnp.max(jnp.abs(item_out - i_ref)))

    print("KERNEL_OK")
</pallas_src>

<mosaic_0001>
module attributes {stable_mosaic.version = 11 : i64} {
  func.func @_transform_kernel(%arg0: i32, %arg1: memref<64x32xf32, #tpu.memory_space<vmem>>, %arg2: memref<32x40xf32, #tpu.memory_space<vmem>>, %arg3: memref<64x40xbf16, #tpu.memory_space<vmem>>) attributes {dimension_semantics = [#tpu.dimension_semantics<parallel>], iteration_bounds = array<i64: 1>, scalar_prefetch = 0 : i64, scratch_operands = 0 : i64, tpu.core_type = #tpu.core_type<tc>, window_params = [{transform_indices = @transform_0, window_bounds = array<i64: 64, 32>}, {pipeline_mode = #tpu.pipeline_mode<synchronous>, transform_indices = @transform_1, window_bounds = array<i64: 32, 40>}, {transform_indices = @transform_2, window_bounds = array<i64: 64, 40>}]} {
    %c0 = arith.constant 0 : index
    %c0_0 = arith.constant 0 : index
    %0 = vector.load %arg1[%c0, %c0_0] : memref<64x32xf32, #tpu.memory_space<vmem>>, vector<64x32xf32>
    %c0_1 = arith.constant 0 : index
    %c0_2 = arith.constant 0 : index
    %1 = vector.load %arg2[%c0_1, %c0_2] : memref<32x40xf32, #tpu.memory_space<vmem>>, vector<32x40xf32>
    %cst = arith.constant dense<0.000000e+00> : vector<64x40xf32>
    %2 = tpu.matmul %0, %1, %cst {dimension_numbers = #tpu.dot_dimension_numbers<[1], [0], [0], [1], [0, 0, 1, 1], [], []>} : vector<64x32xf32>, vector<32x40xf32>, vector<64x40xf32> -> vector<64x40xf32>
    %3 = arith.truncf %2 : vector<64x40xf32> to vector<64x40xbf16>
    %c0_3 = arith.constant 0 : index
    %c0_4 = arith.constant 0 : index
    %4 = vector.load %arg3[%c0_3, %c0_4] : memref<64x40xbf16, #tpu.memory_space<vmem>>, vector<64x40xbf16>
    tpu.vector_store %arg3[%c0_3, %c0_4], %3 {strides = array<i32>} : memref<64x40xbf16, #tpu.memory_space<vmem>>, vector<64x40xbf16>,
    return
  }
  func.func @transform_0(%arg0: i32) -> (i32, i32) {
    %c0_i32 = arith.constant 0 : i32
    %c0_i32_0 = arith.constant 0 : i32
    return %arg0, %c0_i32 : i32, i32
  }
  func.func @transform_1(%arg0: i32) -> (i32, i32) {
    %c0_i32 = arith.constant 0 : i32
    %c0_i32_0 = arith.constant 0 : i32
    %c0_i32_1 = arith.constant 0 : i32
    return %c0_i32, %c0_i32_0 : i32, i32
  }
  func.func @transform_2(%arg0: i32) -> (i32, i32) {
    %c0_i32 = arith.constant 0 : i32
    %c0_i32_0 = arith.constant 0 : i32
    return %arg0, %c0_i32 : i32, i32
  }
}

module attributes {stable_mosaic.version = 11 : i64} {
  func.func @_transform_kernel(%arg0: i32, %arg1: memref<48x32xf32, #tpu.memory_space<vmem>>, %arg2: memref<32x40xf32, #tpu.memory_space<vmem>>, %arg3: memref<48x40xbf16, #tpu.memory_space<vmem>>) attributes {dimension_semantics = [#tpu.dimension_semantics<parallel>], iteration_bounds = array<i64: 1>, scalar_prefetch = 0 : i64, scratch_operands = 0 : i64, tpu.core_type = #tpu.core_type<tc>, window_params = [{transform_indices = @transform_0, window_bounds = array<i64: 48, 32>}, {pipeline_mode = #tpu.pipeline_mode<synchronous>, transform_indices = @transform_1, window_bounds = array<i64: 32, 40>}, {transform_indices = @transform_2, window_bounds = array<i64: 48, 40>}]} {
    %c0 = arith.constant 0 : index
    %c0_0 = arith.constant 0 : index
    %0 = vector.load %arg1[%c0, %c0_0] : memref<48x32xf32, #tpu.memory_space<vmem>>, vector<48x32xf32>
    %c0_1 = arith.constant 0 : index
    %c0_2 = arith.constant 0 : index
    %1 = vector.load %arg2[%c0_1, %c0_2] : memref<32x40xf32, #tpu.memory_space<vmem>>, vector<32x40xf32>
    %cst = arith.constant dense<0.000000e+00> : vector<48x40xf32>
    %2 = tpu.matmul %0, %1, %cst {dimension_numbers = #tpu.dot_dimension_numbers<[1], [0], [0], [1], [0, 0, 1, 1], [], []>} : vector<48x32xf32>, vector<32x40xf32>, vector<48x40xf32> -> vector<48x40xf32>
    %3 = arith.truncf %2 : vector<48x40xf32> to vector<48x40xbf16>
    %c0_3 = arith.constant 0 : index
    %c0_4 = arith.constant 0 : index
    %4 = vector.load %arg3[%c0_3, %c0_4] : memref<48x40xbf16, #tpu.memory_space<vmem>>, vector<48x40xbf16>
    tpu.vector_store %arg3[%c0_3, %c0_4], %3 {strides = array<i32>} : memref<48x40xbf16, #tpu.memory_space<vmem>>, vector<48x40xbf16>,
    return
  }
  func.func @transform_0(%arg0: i32) -> (i32, i32) {
    %c0_i32 = arith.constant 0 : i32
    %c0_i32_0 = arith.constant 0 : i32
    return %arg0, %c0_i32 : i32, i32
  }
  func.func @transform_1(%arg0: i32) -> (i32, i32) {
    %c0_i32 = arith.constant 0 : i32
    %c0_i32_0 = arith.constant 0 : i32
    %c0_i32_1 = arith.constant 0 : i32
    return %c0_i32, %c0_i32_0 : i32, i32
  }
  func.func @transform_2(%arg0: i32) -> (i32, i32) {
    %c0_i32 = arith.constant 0 : i32
    %c0_i32_0 = arith.constant 0 : i32
    return %arg0, %c0_i32 : i32, i32
  }
}

module attributes {stable_mosaic.version = 11 : i64} {
  func.func @agg_kernel(%arg0: i32, %arg1: i32, %arg2: memref<5x48x128xbf16, #tpu.memory_space<vmem>>, %arg3: memref<128x40xbf16, #tpu.memory_space<vmem>>, %arg4: memref<1x40xf32, #tpu.memory_space<vmem>>, %arg5: memref<48x40xf32, #tpu.memory_space<vmem>>, %arg6: memref<48x40xf32, #tpu.memory_space<vmem>>) attributes {dimension_semantics = [#tpu.dimension_semantics<parallel>, #tpu.dimension_semantics<arbitrary>], iteration_bounds = array<i64: 1, 1>, scalar_prefetch = 0 : i64, scratch_operands = 1 : i64, tpu.core_type = #tpu.core_type<tc>, window_params = [{transform_indices = @transform_0, window_bounds = array<i64: 5, 48, 128>}, {transform_indices = @transform_1, window_bounds = array<i64: 128, 40>}, {pipeline_mode = #tpu.pipeline_mode<synchronous>, transform_indices = @transform_2, window_bounds = array<i64: 1, 40>}, {transform_indices = @transform_3, window_bounds = array<i64: 48, 40>}]} {
    %c0_i32 = arith.constant 0 : i32
    %0 = arith.cmpi eq, %arg1, %c0_i32 : i32
    %1 = arith.extui %0 : i1 to i32
    %c0_i32_0 = arith.constant 0 : i32
    %2 = arith.cmpi ne, %1, %c0_i32_0 : i32
    scf.if %2 {
      %cst_35 = arith.constant 0.000000e+00 : f32
      %42 = vector.broadcast %cst_35 : f32 to vector<48x40xf32>
      %c0_36 = arith.constant 0 : index
      %c0_37 = arith.constant 0 : index
      %43 = vector.load %arg6[%c0_36, %c0_37] : memref<48x40xf32, #tpu.memory_space<vmem>>, vector<48x40xf32>
      tpu.vector_store %arg6[%c0_36, %c0_37], %42 {strides = array<i32>} : memref<48x40xf32, #tpu.memory_space<vmem>>, vector<48x40xf32>,
    } else {
    }
    %c0 = arith.constant 0 : index
    %c0_1 = arith.constant 0 : index
    %3 = vector.load %arg3[%c0, %c0_1] : memref<128x40xbf16, #tpu.memory_space<vmem>>, vector<128x40xbf16>
    %c0_2 = arith.constant 0 : index
    %c0_3 = arith.constant 0 : index
    %4 = vector.load %arg6[%c0_2, %c0_3] : memref<48x40xf32, #tpu.memory_space<vmem>>, vector<48x8xf32>
    %c0_4 = arith.constant 0 : index
    %c0_5 = arith.constant 0 : index
    %c0_6 = arith.constant 0 : index
    %5 = vector.load %arg2[%c0_4, %c0_5, %c0_6] : memref<5x48x128xbf16, #tpu.memory_space<vmem>>, vector<1x48x128xbf16>
    %6 = vector.shape_cast %5 : vector<1x48x128xbf16> to vector<48x128xbf16>
    %7 = vector.extract_strided_slice %3 {offsets = [0, 0], sizes = [128, 8], strides = [1, 1]} : vector<128x40xbf16> to vector<128x8xbf16>
    %cst = arith.constant dense<0.000000e+00> : vector<48x8xf32>
    %8 = tpu.matmul %6, %7, %cst {dimension_numbers = #tpu.dot_dimension_numbers<[1], [0], [0], [1], [0, 0, 1, 1], [], []>} : vector<48x128xbf16>, vector<128x8xbf16>, vector<48x8xf32> -> vector<48x8xf32>
    %9 = arith.addf %4, %8 : vector<48x8xf32>
    %c0_7 = arith.constant 0 : index
    %c0_8 = arith.constant 0 : index
    %10 = vector.load %arg6[%c0_7, %c0_8] : memref<48x40xf32, #tpu.memory_space<vmem>>, vector<48x8xf32>
    tpu.vector_store %arg6[%c0_7, %c0_8], %9 {strides = array<i32>} : memref<48x40xf32, #tpu.memory_space<vmem>>, vector<48x8xf32>,
    %c0_9 = arith.constant 0 : index
    %c8 = arith.constant 8 : index
    %11 = vector.load %arg6[%c0_9, %c8] : memref<48x40xf32, #tpu.memory_space<vmem>>, vector<48x8xf32>
    %c1 = arith.constant 1 : index
    %c0_10 = arith.constant 0 : index
    %c0_11 = arith.constant 0 : index
    %12 = vector.load %arg2[%c1, %c0_10, %c0_11] : memref<5x48x128xbf16, #tpu.memory_space<vmem>>, vector<1x48x128xbf16>
    %13 = vector.shape_cast %12 : vector<1x48x128xbf16> to vector<48x128xbf16>
    %14 = vector.extract_strided_slice %3 {offsets = [0, 8], sizes = [128, 8], strides = [1, 1]} : vector<128x40xbf16> to vector<128x8xbf16>
    %cst_12 = arith.constant dense<0.000000e+00> : vector<48x8xf32>
    %15 = tpu.matmul %13, %14, %cst_12 {dimension_numbers = #tpu.dot_dimension_numbers<[1], [0], [0], [1], [0, 0, 1, 1], [], []>} : vector<48x128xbf16>, vector<128x8xbf16>, vector<48x8xf32> -> vector<48x8xf32>
    %16 = arith.addf %11, %15 : vector<48x8xf32>
    %c0_13 = arith.constant 0 : index
    %c8_14 = arith.constant 8 : index
    %17 = vector.load %arg6[%c0_13, %c8_14] : memref<48x40xf32, #tpu.memory_space<vmem>>, vector<48x8xf32>
    tpu.vector_store %arg6[%c0_13, %c8_14], %16 {strides = array<i32>} : memref<48x40xf32, #tpu.memory_space<vmem>>, vector<48x8xf32>,
    %c0_15 = arith.constant 0 : index
    %c16 = arith.constant 16 : index
    %18 = vector.load %arg6[%c0_15, %c16] : memref<48x40xf32, #tpu.memory_space<vmem>>, vector<48x8xf32>
    %c2 = arith.constant 2 : index
    %c0_16 = arith.constant 0 : index
    %c0_17 = arith.constant 0 : index
    %19 = vector.load %arg2[%c2, %c0_16, %c0_17] : memref<5x48x128xbf16, #tpu.memory_space<vmem>>, vector<1x48x128xbf16>
    %20 = vector.shape_cast %19 : vector<1x48x128xbf16> to vector<48x128xbf16>
    %21 = vector.extract_strided_slice %3 {offsets = [0, 16], sizes = [128, 8], strides = [1, 1]} : vector<128x40xbf16> to vector<128x8xbf16>
    %cst_18 = arith.constant dense<0.000000e+00> : vector<48x8xf32>
    %22 = tpu.matmul %20, %21, %cst_18 {dimension_numbers = #tpu.dot_dimension_numbers<[1], [0], [0], [1], [0, 0, 1, 1], [], []>} : vector<48x128xbf16>, vector<128x8xbf16>, vector<48x8xf32> -> vector<48x8xf32>
    %23 = arith.addf %18, %22 : vector<48x8xf32>
    %c0_19 = arith.constant 0 : index
    %c16_20 = arith.constant 16 : index
    %24 = vector.load %arg6[%c0_19, %c16_20] : memref<48x40xf32, #tpu.memory_space<vmem>>, vector<48x8xf32>
    tpu.vector_store %arg6[%c0_19, %c16_20], %23 {strides = array<i32>} : memref<48x40xf32, #tpu.memory_space<vmem>>, vector<48x8xf32>,
    %c0_21 = arith.constant 0 : index
    %c24 = arith.constant 24 : index
    %25 = vector.load %arg6[%c0_21, %c24] : memref<48x40xf32, #tpu.memory_space<vmem>>, vector<48x8xf32>
    %c3 = arith.constant 3 : index
    %c0_22 = arith.constant 0 : index
    %c0_23 = arith.constant 0 : index
    %26 = vector.load %arg2[%c3, %c0_22, %c0_23] : memref<5x48x128xbf16, #tpu.memory_space<vmem>>, vector<1x48x128xbf16>
    %27 = vector.shape_cast %26 : vector<1x48x128xbf16> to vector<48x128xbf16>
    %28 = vector.extract_strided_slice %3 {offsets = [0, 24], sizes = [128, 8], strides = [1, 1]} : vector<128x40xbf16> to vector<128x8xbf16>
    %cst_24 = arith.constant dense<0.000000e+00> : vector<48x8xf32>
    %29 = tpu.matmul %27, %28, %cst_24 {dimension_numbers = #tpu.dot_dimension_numbers<[1], [0], [0], [1], [0, 0, 1, 1], [], []>} : vector<48x128xbf16>, vector<128x8xbf16>, vector<48x8xf32> -> vector<48x8xf32>
    %30 = arith.addf %25, %29 : vector<48x8xf32>
    %c0_25 = arith.constant 0 : index
    %c24_26 = arith.constant 24 : index
    %31 = vector.load %arg6[%c0_25, %c24_26] : memref<48x40xf32, #tpu.memory_space<vmem>>, vector<48x8xf32>
    tpu.vector_store %arg6[%c0_25, %c24_26], %30 {strides = array<i32>} : memref<48x40xf32, #tpu.memory_space<vmem>>, vector<48x8xf32>,
    %c0_27 = arith.constant 0 : index
    %c32 = arith.constant 32 : index
    %32 = vector.load %arg6[%c0_27, %c32] : memref<48x40xf32, #tpu.memory_space<vmem>>, vector<48x8xf32>
    %c4 = arith.constant 4 : index
    %c0_28 = arith.constant 0 : index
    %c0_29 = arith.constant 0 : index
    %33 = vector.load %arg2[%c4, %c0_28, %c0_29] : memref<5x48x128xbf16, #tpu.memory_space<vmem>>, vector<1x48x128xbf16>
    %34 = vector.shape_cast %33 : vector<1x48x128xbf16> to vector<48x128xbf16>
    %35 = vector.extract_strided_slice %3 {offsets = [0, 32], sizes = [128, 8], strides = [1, 1]} : vector<128x40xbf16> to vector<128x8xbf16>
    %cst_30 = arith.constant dense<0.000000e+00> : vector<48x8xf32>
    %36 = tpu.matmul %34, %35, %cst_30 {dimension_numbers = #tpu.dot_dimension_numbers<[1], [0], [0], [1], [0, 0, 1, 1], [], []>} : vector<48x128xbf16>, vector<128x8xbf16>, vector<48x8xf32> -> vector<48x8xf32>
    %37 = arith.addf %32, %36 : vector<48x8xf32>
    %c0_31 = arith.constant 0 : index
    %c32_32 = arith.constant 32 : index
    %38 = vector.load %arg6[%c0_31, %c32_32] : memref<48x40xf32, #tpu.memory_space<vmem>>, vector<48x8xf32>
    tpu.vector_store %arg6[%c0_31, %c32_32], %37 {strides = array<i32>} : memref<48x40xf32, #tpu.memory_space<vmem>>, vector<48x8xf32>,
    %c0_i32_33 = arith.constant 0 : i32
    %39 = arith.cmpi eq, %arg1, %c0_i32_33 : i32
    %40 = arith.extui %39 : i1 to i32
    %c0_i32_34 = arith.constant 0 : i32
    %41 = arith.cmpi ne, %40, %c0_i32_34 : i32
    scf.if %41 {
      %c0_35 = arith.constant 0 : index
      %c0_36 = arith.constant 0 : index
      %42 = vector.load %arg6[%c0_35, %c0_36] : memref<48x40xf32, #tpu.memory_space<vmem>>, vector<48x40xf32>
      %cst_37 = arith.constant 0.000000e+00 : f32
      %43 = vector.broadcast %cst_37 : f32 to vector<48x40xf32>
      %44 = arith.maximumf %42, %43 : vector<48x40xf32>
      %c0_38 = arith.constant 0 : index
      %c0_39 = arith.constant 0 : index
      %45 = vector.load %arg4[%c0_38, %c0_39] : memref<1x40xf32, #tpu.memory_space<vmem>>, vector<1x40xf32>
      %46 = vector.broadcast %45 : vector<1x40xf32> to vector<48x40xf32>
      %47 = arith.addf %44, %46 : vector<48x40xf32>
      %c0_40 = arith.constant 0 : index
      %c0_41 = arith.constant 0 : index
      %48 = vector.load %arg5[%c0_40, %c0_41] : memref<48x40xf32, #tpu.memory_space<vmem>>, vector<48x40xf32>
      tpu.vector_store %arg5[%c0_40, %c0_41], %47 {strides = array<i32>} : memref<48x40xf32, #tpu.memory_space<vmem>>, vector<48x40xf32>,
    } else {
    }
    return
  }
  func.func @transform_0(%arg0: i32, %arg1: i32) -> (i32, i32, i32) {
    %c0_i32 = arith.constant 0 : i32
    %c0_i32_0 = arith.constant 0 : i32
    return %c0_i32, %arg0, %arg1 : i32, i32, i32
  }
  func.func @transform_1(%arg0: i32, %arg1: i32) -> (i32, i32) {
    %c0_i32 = arith.constant 0 : i32
    %c0_i32_0 = arith.constant 0 : i32
    return %arg1, %c0_i32 : i32, i32
  }
  func.func @transform_2(%arg0: i32, %arg1: i32) -> (i32, i32) {
    %c0_i32 = arith.constant 0 : i32
    %c0_i32_0 = arith.constant 0 : i32
    %c0_i32_1 = arith.constant 0 : i32
    return %c0_i32, %c0_i32_0 : i32, i32
  }
  func.func @transform_3(%arg0: i32, %arg1: i32) -> (i32, i32) {
    %c0_i32 = arith.constant 0 : i32
    %c0_i32_0 = arith.constant 0 : i32
    return %arg0, %c0_i32 : i32, i32
  }
}

module attributes {stable_mosaic.version = 11 : i64} {
  func.func @agg_kernel(%arg0: i32, %arg1: i32, %arg2: memref<5x64x128xbf16, #tpu.memory_space<vmem>>, %arg3: memref<128x40xbf16, #tpu.memory_space<vmem>>, %arg4: memref<1x40xf32, #tpu.memory_space<vmem>>, %arg5: memref<64x40xf32, #tpu.memory_space<vmem>>, %arg6: memref<64x40xf32, #tpu.memory_space<vmem>>) attributes {dimension_semantics = [#tpu.dimension_semantics<parallel>, #tpu.dimension_semantics<arbitrary>], iteration_bounds = array<i64: 1, 1>, scalar_prefetch = 0 : i64, scratch_operands = 1 : i64, tpu.core_type = #tpu.core_type<tc>, window_params = [{transform_indices = @transform_0, window_bounds = array<i64: 5, 64, 128>}, {transform_indices = @transform_1, window_bounds = array<i64: 128, 40>}, {pipeline_mode = #tpu.pipeline_mode<synchronous>, transform_indices = @transform_2, window_bounds = array<i64: 1, 40>}, {transform_indices = @transform_3, window_bounds = array<i64: 64, 40>}]} {
    %c0_i32 = arith.constant 0 : i32
    %0 = arith.cmpi eq, %arg1, %c0_i32 : i32
    %1 = arith.extui %0 : i1 to i32
    %c0_i32_0 = arith.constant 0 : i32
    %2 = arith.cmpi ne, %1, %c0_i32_0 : i32
    scf.if %2 {
      %cst_35 = arith.constant 0.000000e+00 : f32
      %42 = vector.broadcast %cst_35 : f32 to vector<64x40xf32>
      %c0_36 = arith.constant 0 : index
      %c0_37 = arith.constant 0 : index
      %43 = vector.load %arg6[%c0_36, %c0_37] : memref<64x40xf32, #tpu.memory_space<vmem>>, vector<64x40xf32>
      tpu.vector_store %arg6[%c0_36, %c0_37], %42 {strides = array<i32>} : memref<64x40xf32, #tpu.memory_space<vmem>>, vector<64x40xf32>,
    } else {
    }
    %c0 = arith.constant 0 : index
    %c0_1 = arith.constant 0 : index
    %3 = vector.load %arg3[%c0, %c0_1] : memref<128x40xbf16, #tpu.memory_space<vmem>>, vector<128x40xbf16>
    %c0_2 = arith.constant 0 : index
    %c0_3 = arith.constant 0 : index
    %4 = vector.load %arg6[%c0_2, %c0_3] : memref<64x40xf32, #tpu.memory_space<vmem>>, vector<64x8xf32>
    %c0_4 = arith.constant 0 : index
    %c0_5 = arith.constant 0 : index
    %c0_6 = arith.constant 0 : index
    %5 = vector.load %arg2[%c0_4, %c0_5, %c0_6] : memref<5x64x128xbf16, #tpu.memory_space<vmem>>, vector<1x64x128xbf16>
    %6 = vector.shape_cast %5 : vector<1x64x128xbf16> to vector<64x128xbf16>
    %7 = vector.extract_strided_slice %3 {offsets = [0, 0], sizes = [128, 8], strides = [1, 1]} : vector<128x40xbf16> to vector<128x8xbf16>
    %cst = arith.constant dense<0.000000e+00> : vector<64x8xf32>
    %8 = tpu.matmul %6, %7, %cst {dimension_numbers = #tpu.dot_dimension_numbers<[1], [0], [0], [1], [0, 0, 1, 1], [], []>} : vector<64x128xbf16>, vector<128x8xbf16>, vector<64x8xf32> -> vector<64x8xf32>
    %9 = arith.addf %4, %8 : vector<64x8xf32>
    %c0_7 = arith.constant 0 : index
    %c0_8 = arith.constant 0 : index
    %10 = vector.load %arg6[%c0_7, %c0_8] : memref<64x40xf32, #tpu.memory_space<vmem>>, vector<64x8xf32>
    tpu.vector_store %arg6[%c0_7, %c0_8], %9 {strides = array<i32>} : memref<64x40xf32, #tpu.memory_space<vmem>>, vector<64x8xf32>,
    %c0_9 = arith.constant 0 : index
    %c8 = arith.constant 8 : index
    %11 = vector.load %arg6[%c0_9, %c8] : memref<64x40xf32, #tpu.memory_space<vmem>>, vector<64x8xf32>
    %c1 = arith.constant 1 : index
    %c0_10 = arith.constant 0 : index
    %c0_11 = arith.constant 0 : index
    %12 = vector.load %arg2[%c1, %c0_10, %c0_11] : memref<5x64x128xbf16, #tpu.memory_space<vmem>>, vector<1x64x128xbf16>
    %13 = vector.shape_cast %12 : vector<1x64x128xbf16> to vector<64x128xbf16>
    %14 = vector.extract_strided_slice %3 {offsets = [0, 8], sizes = [128, 8], strides = [1, 1]} : vector<128x40xbf16> to vector<128x8xbf16>
    %cst_12 = arith.constant dense<0.000000e+00> : vector<64x8xf32>
    %15 = tpu.matmul %13, %14, %cst_12 {dimension_numbers = #tpu.dot_dimension_numbers<[1], [0], [0], [1], [0, 0, 1, 1], [], []>} : vector<64x128xbf16>, vector<128x8xbf16>, vector<64x8xf32> -> vector<64x8xf32>
    %16 = arith.addf %11, %15 : vector<64x8xf32>
    %c0_13 = arith.constant 0 : index
    %c8_14 = arith.constant 8 : index
    %17 = vector.load %arg6[%c0_13, %c8_14] : memref<64x40xf32, #tpu.memory_space<vmem>>, vector<64x8xf32>
    tpu.vector_store %arg6[%c0_13, %c8_14], %16 {strides = array<i32>} : memref<64x40xf32, #tpu.memory_space<vmem>>, vector<64x8xf32>,
    %c0_15 = arith.constant 0 : index
    %c16 = arith.constant 16 : index
    %18 = vector.load %arg6[%c0_15, %c16] : memref<64x40xf32, #tpu.memory_space<vmem>>, vector<64x8xf32>
    %c2 = arith.constant 2 : index
    %c0_16 = arith.constant 0 : index
    %c0_17 = arith.constant 0 : index
    %19 = vector.load %arg2[%c2, %c0_16, %c0_17] : memref<5x64x128xbf16, #tpu.memory_space<vmem>>, vector<1x64x128xbf16>
    %20 = vector.shape_cast %19 : vector<1x64x128xbf16> to vector<64x128xbf16>
    %21 = vector.extract_strided_slice %3 {offsets = [0, 16], sizes = [128, 8], strides = [1, 1]} : vector<128x40xbf16> to vector<128x8xbf16>
    %cst_18 = arith.constant dense<0.000000e+00> : vector<64x8xf32>
    %22 = tpu.matmul %20, %21, %cst_18 {dimension_numbers = #tpu.dot_dimension_numbers<[1], [0], [0], [1], [0, 0, 1, 1], [], []>} : vector<64x128xbf16>, vector<128x8xbf16>, vector<64x8xf32> -> vector<64x8xf32>
    %23 = arith.addf %18, %22 : vector<64x8xf32>
    %c0_19 = arith.constant 0 : index
    %c16_20 = arith.constant 16 : index
    %24 = vector.load %arg6[%c0_19, %c16_20] : memref<64x40xf32, #tpu.memory_space<vmem>>, vector<64x8xf32>
    tpu.vector_store %arg6[%c0_19, %c16_20], %23 {strides = array<i32>} : memref<64x40xf32, #tpu.memory_space<vmem>>, vector<64x8xf32>,
    %c0_21 = arith.constant 0 : index
    %c24 = arith.constant 24 : index
    %25 = vector.load %arg6[%c0_21, %c24] : memref<64x40xf32, #tpu.memory_space<vmem>>, vector<64x8xf32>
    %c3 = arith.constant 3 : index
    %c0_22 = arith.constant 0 : index
    %c0_23 = arith.constant 0 : index
    %26 = vector.load %arg2[%c3, %c0_22, %c0_23] : memref<5x64x128xbf16, #tpu.memory_space<vmem>>, vector<1x64x128xbf16>
    %27 = vector.shape_cast %26 : vector<1x64x128xbf16> to vector<64x128xbf16>
    %28 = vector.extract_strided_slice %3 {offsets = [0, 24], sizes = [128, 8], strides = [1, 1]} : vector<128x40xbf16> to vector<128x8xbf16>
    %cst_24 = arith.constant dense<0.000000e+00> : vector<64x8xf32>
    %29 = tpu.matmul %27, %28, %cst_24 {dimension_numbers = #tpu.dot_dimension_numbers<[1], [0], [0], [1], [0, 0, 1, 1], [], []>} : vector<64x128xbf16>, vector<128x8xbf16>, vector<64x8xf32> -> vector<64x8xf32>
    %30 = arith.addf %25, %29 : vector<64x8xf32>
    %c0_25 = arith.constant 0 : index
    %c24_26 = arith.constant 24 : index
    %31 = vector.load %arg6[%c0_25, %c24_26] : memref<64x40xf32, #tpu.memory_space<vmem>>, vector<64x8xf32>
    tpu.vector_store %arg6[%c0_25, %c24_26], %30 {strides = array<i32>} : memref<64x40xf32, #tpu.memory_space<vmem>>, vector<64x8xf32>,
    %c0_27 = arith.constant 0 : index
    %c32 = arith.constant 32 : index
    %32 = vector.load %arg6[%c0_27, %c32] : memref<64x40xf32, #tpu.memory_space<vmem>>, vector<64x8xf32>
    %c4 = arith.constant 4 : index
    %c0_28 = arith.constant 0 : index
    %c0_29 = arith.constant 0 : index
    %33 = vector.load %arg2[%c4, %c0_28, %c0_29] : memref<5x64x128xbf16, #tpu.memory_space<vmem>>, vector<1x64x128xbf16>
    %34 = vector.shape_cast %33 : vector<1x64x128xbf16> to vector<64x128xbf16>
    %35 = vector.extract_strided_slice %3 {offsets = [0, 32], sizes = [128, 8], strides = [1, 1]} : vector<128x40xbf16> to vector<128x8xbf16>
    %cst_30 = arith.constant dense<0.000000e+00> : vector<64x8xf32>
    %36 = tpu.matmul %34, %35, %cst_30 {dimension_numbers = #tpu.dot_dimension_numbers<[1], [0], [0], [1], [0, 0, 1, 1], [], []>} : vector<64x128xbf16>, vector<128x8xbf16>, vector<64x8xf32> -> vector<64x8xf32>
    %37 = arith.addf %32, %36 : vector<64x8xf32>
    %c0_31 = arith.constant 0 : index
    %c32_32 = arith.constant 32 : index
    %38 = vector.load %arg6[%c0_31, %c32_32] : memref<64x40xf32, #tpu.memory_space<vmem>>, vector<64x8xf32>
    tpu.vector_store %arg6[%c0_31, %c32_32], %37 {strides = array<i32>} : memref<64x40xf32, #tpu.memory_space<vmem>>, vector<64x8xf32>,
    %c0_i32_33 = arith.constant 0 : i32
    %39 = arith.cmpi eq, %arg1, %c0_i32_33 : i32
    %40 = arith.extui %39 : i1 to i32
    %c0_i32_34 = arith.constant 0 : i32
    %41 = arith.cmpi ne, %40, %c0_i32_34 : i32
    scf.if %41 {
      %c0_35 = arith.constant 0 : index
      %c0_36 = arith.constant 0 : index
      %42 = vector.load %arg6[%c0_35, %c0_36] : memref<64x40xf32, #tpu.memory_space<vmem>>, vector<64x40xf32>
      %cst_37 = arith.constant 0.000000e+00 : f32
      %43 = vector.broadcast %cst_37 : f32 to vector<64x40xf32>
      %44 = arith.maximumf %42, %43 : vector<64x40xf32>
      %c0_38 = arith.constant 0 : index
      %c0_39 = arith.constant 0 : index
      %45 = vector.load %arg4[%c0_38, %c0_39] : memref<1x40xf32, #tpu.memory_space<vmem>>, vector<1x40xf32>
      %46 = vector.broadcast %45 : vector<1x40xf32> to vector<64x40xf32>
      %47 = arith.addf %44, %46 : vector<64x40xf32>
      %c0_40 = arith.constant 0 : index
      %c0_41 = arith.constant 0 : index
      %48 = vector.load %arg5[%c0_40, %c0_41] : memref<64x40xf32, #tpu.memory_space<vmem>>, vector<64x40xf32>
      tpu.vector_store %arg5[%c0_40, %c0_41], %47 {strides = array<i32>} : memref<64x40xf32, #tpu.memory_space<vmem>>, vector<64x40xf32>,
    } else {
    }
    return
  }
  func.func @transform_0(%arg0: i32, %arg1: i32) -> (i32, i32, i32) {
    %c0_i32 = arith.constant 0 : i32
    %c0_i32_0 = arith.constant 0 : i32
    return %c0_i32, %arg0, %arg1 : i32, i32, i32
  }
  func.func @transform_1(%arg0: i32, %arg1: i32) -> (i32, i32) {
    %c0_i32 = arith.constant 0 : i32
    %c0_i32_0 = arith.constant 0 : i32
    return %arg1, %c0_i32 : i32, i32
  }
  func.func @transform_2(%arg0: i32, %arg1: i32) -> (i32, i32) {
    %c0_i32 = arith.constant 0 : i32
    %c0_i32_0 = arith.constant 0 : i32
    %c0_i32_1 = arith.constant 0 : i32
    return %c0_i32, %c0_i32_0 : i32, i32
  }
  func.func @transform_3(%arg0: i32, %arg1: i32) -> (i32, i32) {
    %c0_i32 = arith.constant 0 : i32
    %c0_i32_0 = arith.constant 0 : i32
    return %arg0, %c0_i32 : i32, i32
  }
}

</mosaic_0001>

<bundles_post_ra>
// kernel: stack_gcn_encoder.5
= control target key start
LH: loop header
LB: loop body
LE: loop exit
PB: predicated region body
PF: predicated region fallthrough
CT: control target
= control target key end

     0   :  { %vm21_vm0 = vcmask 261120   ;;  %vm159_vm1 = vcmask 322560   ;;  %s302_s1 = inlined_call_operand.vmem [shape: f32[32,40], index: 1, kind: input, shape index: {}]   ;;  %s303_s0 = inlined_call_operand.vmem [shape: f32[48,32], index: 0, kind: input, shape index: {}]   ;;  %s304_s2 = inlined_call_operand.vmem [shape: bf16[48,40], index: 2, kind: output, shape index: {}]  }
   0x1   :  { %v17_v0 = vld [vmem:[%s302_s1] sm:$0xff]  ;;  %v18_v1 = vld [vmem:[%s302_s1 + $0x8] sm:$0xff]  ;;  %v19_v2 = vld [vmem:[%s302_s1 + $0x10] sm:$0xff] }
   0x2   :  { %v215_v3 = vpack.c.bf16 %v18_v1, %v17_v0  ;;  %v20_v4 = vld [vmem:[%s302_s1 + $0x18] sm:$0xff]  ;;  %v13_v5 = vld [vmem:[%s303_s0 + $0x10] sm:$0xff]  ;;  %v11_v7 = vld [vmem:[%s303_s0] sm:$0xff] }
   0x3   :  { %v219_v6 = vpack.c.bf16 %v20_v4, %v19_v2  ;;  %209 = vmatprep.mubr.msk.f32.mxu1 %vm21_vm0, %v13_v5  ;;  %206 = vmatprep.mubr.msk.f32.mxu0 %vm21_vm0, %v11_v7  ;;  %v14_v8 = vld [vmem:[%s303_s0 + $0x18] sm:$0xff]  ;;  %v12_v9 = vld [vmem:[%s303_s0 + $0x8] sm:$0xff]  ;;  %v15_v10 = vld [vmem:[%s303_s0 + $0x20] sm:$0xff] }
   0x4   :  { %223 = vmatprep.subr.bf16.mxu1 %v215_v3  ;;  %216 = vmatprep.subr.bf16.mxu0 %v215_v3  ;;  %v16_v11 = vld [vmem:[%s303_s0 + $0x28] sm:$0xff] }
   0x5   :  { %225 = vmatpush3.bf16.msra.mxu1 %v215_v3  ;;  %218 = vmatpush3.bf16.msra.mxu0 %v215_v3 }
   0x6   :  { %224 = vmatprep.subr.bf16.mxu1 %v219_v6  ;;  %220 = vmatprep.subr.bf16.mxu0 %v219_v6 }
   0x9   :  { %226 = vmatpush3.bf16.msra.mxu1 %v219_v6  ;;  %222 = vmatpush3.bf16.msra.mxu0 %v219_v6 }
   0xc   :  { %210 = vmatmul.mubr.msk.f32.vlgmr.msra.gmra.mrb[0].mxu1 %vm21_vm0, %v14_v8  ;;  %207 = vmatmul.mubr.msk.f32.vlgmr.msra.gmra.mrb[0].mxu0 %vm21_vm0, %v12_v9 }
   0xd   :  { %212 = vmatprep.mubr.msk.f32.mxu1 %vm21_vm0, %v15_v10 }
  0x10   :  { %213 = vmatmul.mubr.msk.f32.gmra.mrb[2].mxu1 %vm21_vm0, %v16_v11 }
  0xdf   :  { %v211_v12 = vpop.f32.mrb[0].mxu1  ;;  %v208_v13 = vpop.f32.mrb[0].mxu0 }
  0xe0   :  { %v185_v14 = vpack.c.bf16 %v211_v12, %v211_v12  ;;  %v116_v15 = vpop.f32.mrb[1].mxu1  ;;  %v183_v16 = vpack.c.bf16 %v208_v13, %v208_v13  ;;  %v106_v17 = vpop.f32.mrb[1].mxu0 }
  0xe1   :  { %v184_v18 = vpack.c.bf16 %v116_v15, %v116_v15  ;;  %v182_v19 = vpack.c.bf16 %v106_v17, %v106_v17 }
  0xe2   :  { %163 = vst.msk [vmem:[%s304_s2 + $0xc] sm:$0xf] %vm159_vm1, %v185_v14  ;;  %161 = vst.msk [vmem:[%s304_s2 + $0x4] sm:$0xf] %vm159_vm1, %v183_v16 }
  0xe3   :  { %162 = vst.msk [vmem:[%s304_s2 + $0x8] sm:$0xf] %vm159_vm1, %v184_v18  ;;  %160 = vst.msk [vmem:[%s304_s2] sm:$0xf] %vm159_vm1, %v182_v19  ;;  %v214_v20 = vpop.f32.mrb[2].mxu1 }
  0xe4   :  { %v187_v21 = vpack.c.bf16 %v214_v20, %v214_v20  ;;  %v126_v22 = vpop.f32.mrb[3].mxu1 }
  0xe5   :  { %v186_v23 = vpack.c.bf16 %v126_v22, %v126_v22 }
  0xe6   :  { %165 = vst.msk [vmem:[%s304_s2 + $0x14] sm:$0xf] %vm159_vm1, %v187_v21 }
  0xe7   :  { %164 = vst.msk [vmem:[%s304_s2 + $0x10] sm:$0xf] %vm159_vm1, %v186_v23 }

// kernel: stack_gcn_encoder.4
= control target key start
LH: loop header
LB: loop body
LE: loop exit
PB: predicated region body
PF: predicated region fallthrough
CT: control target
= control target key end

     0   :  { %vm23_vm0 = vcmask 261120   ;;  %vm185_vm1 = vcmask 322560   ;;  %s357_s1 = inlined_call_operand.vmem [shape: f32[32,40], index: 1, kind: input, shape index: {}]   ;;  %s358_s0 = inlined_call_operand.vmem [shape: f32[64,32], index: 0, kind: input, shape index: {}]   ;;  %s359_s2 = inlined_call_operand.vmem [shape: bf16[64,40], index: 2, kind: output, shape index: {}]  }
   0x1   :  { %v19_v0 = vld [vmem:[%s357_s1] sm:$0xff]  ;;  %v20_v1 = vld [vmem:[%s357_s1 + $0x8] sm:$0xff]  ;;  %v21_v2 = vld [vmem:[%s357_s1 + $0x10] sm:$0xff] }
   0x2   :  { %v254_v3 = vpack.c.bf16 %v20_v1, %v19_v0  ;;  %v22_v4 = vld [vmem:[%s357_s1 + $0x18] sm:$0xff]  ;;  %v11_v5 = vld [vmem:[%s358_s0] sm:$0xff]  ;;  %v12_v8 = vld [vmem:[%s358_s0 + $0x8] sm:$0xff] }
   0x3   :  { %v15_v6 = vld [vmem:[%s358_s0 + $0x20] sm:$0xff]  ;;  %v258_v7 = vpack.c.bf16 %v22_v4, %v21_v2  ;;  %242 = vmatprep.mubr.msk.f32.mxu0 %vm23_vm0, %v11_v5  ;;  %v16_v9 = vld [vmem:[%s358_s0 + $0x28] sm:$0xff]  ;;  %v13_v10 = vld [vmem:[%s358_s0 + $0x10] sm:$0xff] }
   0x4   :  { %248 = vmatprep.mubr.msk.f32.mxu1 %vm23_vm0, %v15_v6  ;;  %255 = vmatprep.subr.bf16.mxu0 %v254_v3  ;;  %v17_v11 = vld [vmem:[%s358_s0 + $0x30] sm:$0xff]  ;;  %v14_v12 = vld [vmem:[%s358_s0 + $0x18] sm:$0xff] }
   0x5   :  { %262 = vmatprep.subr.bf16.mxu1 %v254_v3  ;;  %257 = vmatpush3.bf16.msra.mxu0 %v254_v3  ;;  %v18_v13 = vld [vmem:[%s358_s0 + $0x38] sm:$0xff] }
   0x6   :  { %264 = vmatpush3.bf16.msra.mxu1 %v254_v3  ;;  %259 = vmatprep.subr.bf16.mxu0 %v258_v7 }
   0x7   :  { %263 = vmatprep.subr.bf16.mxu1 %v258_v7 }
   0x9   :  { %261 = vmatpush3.bf16.msra.mxu0 %v258_v7 }
   0xa   :  { %265 = vmatpush3.bf16.msra.mxu1 %v258_v7 }
   0xc   :  { %243 = vmatmul.mubr.msk.f32.vlgmr.msra.gmra.mrb[0].mxu0 %vm23_vm0, %v12_v8 }
   0xd   :  { %249 = vmatmul.mubr.msk.f32.vlgmr.msra.gmra.mrb[0].mxu1 %vm23_vm0, %v16_v9  ;;  %245 = vmatprep.mubr.msk.f32.mxu0 %vm23_vm0, %v13_v10 }
   0xe   :  { %251 = vmatprep.mubr.msk.f32.mxu1 %vm23_vm0, %v17_v11 }
  0x10   :  { %246 = vmatmul.mubr.msk.f32.gmra.mrb[2].mxu0 %vm23_vm0, %v14_v12 }
  0x11   :  { %252 = vmatmul.mubr.msk.f32.gmra.mrb[2].mxu1 %vm23_vm0, %v18_v13 }
  0xdf   :  { %v244_v14 = vpop.f32.mrb[0].mxu0 }
  0xe0   :  { %v250_v15 = vpop.f32.mrb[0].mxu1  ;;  %v215_v16 = vpack.c.bf16 %v244_v14, %v244_v14  ;;  %v114_v18 = vpop.f32.mrb[1].mxu0 }
  0xe1   :  { %v219_v17 = vpack.c.bf16 %v250_v15, %v250_v15  ;;  %v134_v19 = vpop.f32.mrb[1].mxu1  ;;  %v214_v20 = vpack.c.bf16 %v114_v18, %v114_v18 }
  0xe2   :  { %v218_v21 = vpack.c.bf16 %v134_v19, %v134_v19  ;;  %187 = vst.msk [vmem:[%s359_s2 + $0x4] sm:$0xf] %vm185_vm1, %v215_v16 }
  0xe3   :  { %191 = vst.msk [vmem:[%s359_s2 + $0x14] sm:$0xf] %vm185_vm1, %v219_v17  ;;  %186 = vst.msk [vmem:[%s359_s2] sm:$0xf] %vm185_vm1, %v214_v20  ;;  %v247_v22 = vpop.f32.mrb[2].mxu0 }
  0xe4   :  { %190 = vst.msk [vmem:[%s359_s2 + $0x10] sm:$0xf] %vm185_vm1, %v218_v21  ;;  %v253_v23 = vpop.f32.mrb[2].mxu1  ;;  %v217_v24 = vpack.c.bf16 %v247_v22, %v247_v22  ;;  %v124_v26 = vpop.f32.mrb[3].mxu0 }
  0xe5   :  { %v221_v25 = vpack.c.bf16 %v253_v23, %v253_v23  ;;  %v144_v27 = vpop.f32.mrb[3].mxu1  ;;  %v216_v28 = vpack.c.bf16 %v124_v26, %v124_v26 }
  0xe6   :  { %v220_v29 = vpack.c.bf16 %v144_v27, %v144_v27  ;;  %189 = vst.msk [vmem:[%s359_s2 + $0xc] sm:$0xf] %vm185_vm1, %v217_v24 }
  0xe7   :  { %193 = vst.msk [vmem:[%s359_s2 + $0x1c] sm:$0xf] %vm185_vm1, %v221_v25  ;;  %188 = vst.msk [vmem:[%s359_s2 + $0x8] sm:$0xf] %vm185_vm1, %v216_v28 }
  0xe8   :  { %192 = vst.msk [vmem:[%s359_s2 + $0x18] sm:$0xf] %vm185_vm1, %v220_v29 }

// kernel: stack_gcn_encoder.7
= control target key start
LH: loop header
LB: loop body
LE: loop exit
PB: predicated region body
PF: predicated region fallthrough
CT: control target
= control target key end

     0   :  { %v1117_v1 = vmov 0.0   ;;  %s1118_s16 = smov 120   ;;  %vm1119_vm0 = vmmov 0   ;;  %s1120_s29 = smov 112   ;;  %vm19_vm1 = vcmask 326656   ;;  %vm183_vm2 = vcmask 64512   ;;  %s1392_s1 = inlined_call_operand.vmem [shape: bf16[128,40], index: 1, kind: input, shape index: {}]   ;;  %s1393_s0 = inlined_call_operand.vmem [shape: bf16[5,48,128], index: 0, kind: input, shape index: {}]   ;;  %s1394_s2 = inlined_call_operand.vmem [shape: f32[1,40], index: 2, kind: input, shape index: {}]   ;;  %s1395_s3 = inlined_call_operand.vmem [shape: f32[48,40], index: 3, kind: output, shape index: {}]  }
   0x1   :  { %v1150_v0 = vld [vmem:[%s1392_s1 + $0x10] sm:$0xff]   ;;  %928 = vmatprep.subr.bf16.mxu0 %v1117_v1  ;;  %956 = vmatprep.subr.bf16.mxu1 %v1117_v1  ;;  %v1157_v2 = vld [vmem:[%s1392_s1] sm:$0xff]   ;;  %v1163_v3 = vld [vmem:[%s1392_s1 + $0x18] sm:$0xff]   ;;  %s1121_s30 = smov 104   ;;  %s1122_s9 = smov 96   ;;  %20 = vst.msk [vmem:[#allocation2] sm:$0xff] %vm19_vm1, %v1117_v1 }
   0x2   :  { %225 = vrot.lane.b32.xlu1 %v1150_v0, %s1118_s16  ;;  %221 = vrot.lane.b32.xlu0 %v1157_v2, %s1118_s16  ;;  %v1097_v4 = vld [vmem:[%s1392_s1 + $0x8] sm:$0xff]   ;;  %v1100_v6 = vld [vmem:[%s1392_s1 + $0x20] sm:$0xff]   ;;  %21 = vst.msk [vmem:[#allocation2 + $0x8] sm:$0xff] %vm19_vm1, %v1117_v1  ;;  %22 = vst.msk [vmem:[#allocation2 + $0x10] sm:$0xff] %vm19_vm1, %v1117_v1  ;;  %s1124_s6 = smov 16   ;;  %s1125_s7 = smov 24  }
   0x3   :  { %929 = vmatpush3.bf16.msra.mxu0 %v1157_v2  ;;  %944 = vmatprep.mubr.msk.bf16.mxu0 %vm1119_vm0, %v1117_v1  ;;  %v1098_v5 = vld [vmem:[%s1392_s1 + $0x28] sm:$0xff]   ;;  %v1099_v7 = vld [vmem:[%s1392_s1 + $0x38] sm:$0xff]   ;;  %v1101_v8 = vld [vmem:[%s1392_s1 + $0x30] sm:$0xff]   ;;  %23 = vst.msk [vmem:[#allocation2 + $0x18] sm:$0xff] %vm19_vm1, %v1117_v1  ;;  %s1126_s8 = smov 32   ;;  %vm332_vm3 = vcmask 130112  }
   0x4   :  { %930 = vmatprep.subr.bf16.mxu0 %v1117_v1  ;;  %972 = vmatprep.mubr.msk.bf16.mxu1 %vm1119_vm0, %v1117_v1  ;;  %v1102_v9 = vld [vmem:[%s1393_s0] sm:$0xff]   ;;  %v1103_v10 = vld [vmem:[%s1393_s0 + $0x8] sm:$0xff]   ;;  %v1105_v11 = vld [vmem:[%s1393_s0 + $0x10] sm:$0xff]   ;;  %24 = vst.msk [vmem:[#allocation2 + $0x20] sm:$0xff] %vm19_vm1, %v1117_v1  ;;  %vm481_vm4 = vcmask 195712   ;;  %vm630_vm5 = vcmask 261312  }
   0x5   :  { %25 = vst.msk [vmem:[#allocation2 + $0x28] sm:$0xff] %vm19_vm1, %v1117_v1  ;;  %v1104_v28 = vld [vmem:[%s1393_s0 + $0x18] sm:$0xff]   ;;  %v1106_v33 = vld [vmem:[%s1393_s0 + $0x20] sm:$0xff]   ;;  %v1107_v37 = vld [vmem:[%s1393_s0 + $0x30] sm:$0xff]   ;;  %vm779_vm6 = vcmask 326912  }
   0x6   :  { %227 = vrot.lane.b32.xlu1 %v1163_v3, %s1118_s16  ;;  %223 = vrot.lane.b32.xlu0 %v1097_v4, %s1118_s16  ;;  %v1108_v39 = vld [vmem:[%s1393_s0 + $0x28] sm:$0xff]   ;;  %v1109_v42 = vld [vmem:[%s1393_s0 + $0x38] sm:$0xff]  }
   0x7   :  { %931 = vmatpush3.bf16.msra.mxu0 %v1097_v4  ;;  %v1110_v45 = vld [vmem:[%s1393_s0 + $0x40] sm:$0xff]   ;;  %v1111_v46 = vld [vmem:[%s1393_s0 + $0x48] sm:$0xff]   ;;  %v1112_v49 = vld [vmem:[%s1393_s0 + $0x50] sm:$0xff]  }
   0x8   :  { %932 = vmatprep.subr.bf16.mxu0 %v1117_v1  ;;  %v1113_v52 = vld [vmem:[%s1393_s0 + $0x58] sm:$0xff]   ;;  %v1114_v53 = vld [vmem:[%s1393_s0 + $0x60] sm:$0xff]   ;;  %v1115_v54 = vld [vmem:[%s1393_s0 + $0x68] sm:$0xff]  }
   0x9   :  { %v1116_v55 = vld [vmem:[%s1393_s0 + $0x70] sm:$0xff]   ;;  %v42_v56 = vld [vmem:[#allocation2] sm:$0xff]  ;;  %v43_v58 = vld [vmem:[#allocation2 + $0x8] sm:$0xff]  ;;  %s1123_s0 = smov 8  }
   0xa   :  { %231 = vrot.lane.b32.xlu1 %v1098_v5, %s1118_s16  ;;  %229 = vrot.lane.b32.xlu0 %v1100_v6, %s1118_s16 }
   0xb   :  { %933 = vmatpush3.bf16.msra.mxu0 %v1150_v0 }
   0xc   :  { %934 = vmatprep.subr.bf16.mxu0 %v1117_v1 }
   0xe   :  { %235 = vrot.lane.b32.xlu1 %v1099_v7, %s1118_s16  ;;  %233 = vrot.lane.b32.xlu0 %v1101_v8, %s1118_s16 }
   0xf   :  { %935 = vmatpush3.bf16.msra.mxu0 %v1163_v3 }
  0x10   :  { %936 = vmatprep.subr.bf16.mxu0 %v1117_v1 }
  0x12   :  { %370 = vrot.lane.b32.xlu1 %v1157_v2, %s1120_s29  ;;  %519 = vrot.lane.b32.xlu0 %v1157_v2, %s1121_s30 }
  0x13   :  { %937 = vmatpush3.bf16.msra.mxu0 %v1100_v6 }
  0x14   :  { %938 = vmatprep.subr.bf16.mxu0 %v1117_v1 }
  0x16   :  { %372 = vrot.lane.b32.xlu1 %v1097_v4, %s1120_s29  ;;  %521 = vrot.lane.b32.xlu0 %v1097_v4, %s1121_s30 }
  0x17   :  { %939 = vmatpush3.bf16.msra.mxu0 %v1098_v5 }
  0x18   :  { %940 = vmatprep.subr.bf16.mxu0 %v1117_v1 }
  0x1a   :  { %374 = vrot.lane.b32.xlu1 %v1150_v0, %s1120_s29  ;;  %523 = vrot.lane.b32.xlu0 %v1150_v0, %s1121_s30 }
  0x1b   :  { %941 = vmatpush3.bf16.msra.mxu0 %v1101_v8 }
  0x1c   :  { %942 = vmatprep.subr.bf16.mxu0 %v1117_v1 }
  0x1e   :  { %376 = vrot.lane.b32.xlu1 %v1163_v3, %s1120_s29  ;;  %525 = vrot.lane.b32.xlu0 %v1163_v3, %s1121_s30 }
  0x1f   :  { %943 = vmatpush3.bf16.msra.mxu0 %v1099_v7 }
  0x20   :  { %984 = vmatprep.subr.bf16.mxu0 %v1117_v1 }
  0x22   :  { %378 = vrot.lane.b32.xlu1 %v1100_v6, %s1120_s29  ;;  %945 = vmatmul.mubr.bf16.vlgmr.msra.gmra.mrb[0].mxu0 %v1102_v9 }
  0x23   :  { %527 = vrot.lane.b32.xlu0 %v1100_v6, %s1121_s30  ;;  %948 = vmatprep.mubr.msk.bf16.mxu0 %vm1119_vm0, %v1117_v1 }
  0x26   :  { %380 = vrot.lane.b32.xlu1 %v1098_v5, %s1120_s29 }
  0x27   :  { %529 = vrot.lane.b32.xlu0 %v1098_v5, %s1121_s30 }
  0x2a   :  { %382 = vrot.lane.b32.xlu1 %v1101_v8, %s1120_s29  ;;  %949 = vmatmul.mubr.bf16.gmra.mrb[4].mxu0 %v1103_v10  ;;  %v47_v10 = vld [vmem:[#allocation2 + $0x28] sm:$0xff] }
  0x2b   :  { %531 = vrot.lane.b32.xlu0 %v1101_v8, %s1121_s30  ;;  %952 = vmatprep.mubr.msk.bf16.mxu0 %vm1119_vm0, %v1117_v1 }
  0x2e   :  { %384 = vrot.lane.b32.xlu1 %v1099_v7, %s1120_s29 }
  0x2f   :  { %533 = vrot.lane.b32.xlu0 %v1099_v7, %s1121_s30 }
  0x32   :  { %670 = vrot.lane.b32.xlu1 %v1097_v4, %s1122_s9  ;;  %953 = vmatmul.mubr.bf16.gmra.mrb[8].mxu0 %v1105_v11 }
  0x33   :  { %668 = vrot.lane.b32.xlu0 %v1157_v2, %s1122_s9  ;;  %1000 = vmatprep.mubr.msk.bf16.mxu0 %vm1119_vm0, %v1117_v1  ;;  %v45_v2 = vld [vmem:[#allocation2 + $0x18] sm:$0xff] }
  0x36   :  { %674 = vrot.lane.b32.xlu1 %v1163_v3, %s1122_s9 }
  0x37   :  { %672 = vrot.lane.b32.xlu0 %v1150_v0, %s1122_s9  ;;  %v44_v0 = vld [vmem:[#allocation2 + $0x10] sm:$0xff] }
  0x3a   :  { %678 = vrot.lane.b32.xlu1 %v1098_v5, %s1122_s9 }
  0x3b   :  { %676 = vrot.lane.b32.xlu0 %v1100_v6, %s1122_s9 }
  0x3e   :  { %682 = vrot.lane.b32.xlu1 %v1099_v7, %s1122_s9 }
  0x3f   :  { %680 = vrot.lane.b32.xlu0 %v1101_v8, %s1122_s9  ;;  %v46_v8 = vld [vmem:[#allocation2 + $0x20] sm:$0xff] }
  0x74   :  { %v226_v12 = vpop.permute.xlu1 %225  ;;  %v222_v13 = vpop.permute.xlu0 %221 }
  0x75   :  { %957 = vmatpush3.bf16.msra.mxu1 %v222_v13 }
  0x76   :  { %958 = vmatprep.subr.bf16.mxu1 %v1117_v1 }
  0x78   :  { %v228_v14 = vpop.permute.xlu1 %227  ;;  %v224_v15 = vpop.permute.xlu0 %223 }
  0x79   :  { %959 = vmatpush3.bf16.msra.mxu1 %v224_v15 }
  0x7a   :  { %960 = vmatprep.subr.bf16.mxu1 %v1117_v1 }
  0x7c   :  { %v232_v16 = vpop.permute.xlu1 %231  ;;  %v230_v17 = vpop.permute.xlu0 %229 }
  0x7d   :  { %961 = vmatpush3.bf16.msra.mxu1 %v226_v12 }
  0x7e   :  { %962 = vmatprep.subr.bf16.mxu1 %v1117_v1 }
  0x80   :  { %v236_v18 = vpop.permute.xlu1 %235  ;;  %v234_v19 = vpop.permute.xlu0 %233 }
  0x81   :  { %963 = vmatpush3.bf16.msra.mxu1 %v228_v14 }
  0x82   :  { %964 = vmatprep.subr.bf16.mxu1 %v1117_v1 }
  0x84   :  { %v371_v20 = vpop.permute.xlu1 %370  ;;  %v520_v21 = vpop.permute.xlu0 %519 }
  0x85   :  { %985 = vmatpush3.bf16.msra.mxu0 %v371_v20  ;;  %965 = vmatpush3.bf16.msra.mxu1 %v230_v17 }
  0x86   :  { %986 = vmatprep.subr.bf16.mxu0 %v1117_v1  ;;  %966 = vmatprep.subr.bf16.mxu1 %v1117_v1 }
  0x88   :  { %v373_v22 = vpop.permute.xlu1 %372  ;;  %v522_v23 = vpop.permute.xlu0 %521 }
  0x89   :  { %987 = vmatpush3.bf16.msra.mxu0 %v373_v22  ;;  %967 = vmatpush3.bf16.msra.mxu1 %v232_v16 }
  0x8a   :  { %988 = vmatprep.subr.bf16.mxu0 %v1117_v1  ;;  %968 = vmatprep.subr.bf16.mxu1 %v1117_v1 }
  0x8c   :  { %v375_v24 = vpop.permute.xlu1 %374  ;;  %v524_v25 = vpop.permute.xlu0 %523 }
  0x8d   :  { %989 = vmatpush3.bf16.msra.mxu0 %v375_v24  ;;  %969 = vmatpush3.bf16.msra.mxu1 %v234_v19 }
  0x8e   :  { %990 = vmatprep.subr.bf16.mxu0 %v1117_v1  ;;  %970 = vmatprep.subr.bf16.mxu1 %v1117_v1 }
  0x90   :  { %v377_v26 = vpop.permute.xlu1 %376  ;;  %v526_v27 = vpop.permute.xlu0 %525 }
  0x91   :  { %991 = vmatpush3.bf16.msra.mxu0 %v377_v26  ;;  %971 = vmatpush3.bf16.msra.mxu1 %v236_v18 }
  0x92   :  { %992 = vmatprep.subr.bf16.mxu0 %v1117_v1  ;;  %1012 = vmatprep.subr.bf16.mxu1 %v1117_v1 }
  0x94   :  { %v379_v29 = vpop.permute.xlu1 %378  ;;  %973 = vmatmul.mubr.bf16.vlgmr.msra.gmra.mrb[0].mxu1 %v1104_v28 }
  0x95   :  { %993 = vmatpush3.bf16.msra.mxu0 %v379_v29  ;;  %v528_v30 = vpop.permute.xlu0 %527  ;;  %1013 = vmatpush3.bf16.msra.mxu1 %v520_v21 }
  0x96   :  { %994 = vmatprep.subr.bf16.mxu0 %v1117_v1  ;;  %1014 = vmatprep.subr.bf16.mxu1 %v1117_v1 }
  0x97   :  { %976 = vmatprep.mubr.msk.bf16.mxu1 %vm1119_vm0, %v1117_v1 }
  0x98   :  { %v381_v31 = vpop.permute.xlu1 %380 }
  0x99   :  { %995 = vmatpush3.bf16.msra.mxu0 %v381_v31  ;;  %v530_v32 = vpop.permute.xlu0 %529  ;;  %1015 = vmatpush3.bf16.msra.mxu1 %v522_v23 }
  0x9a   :  { %996 = vmatprep.subr.bf16.mxu0 %v1117_v1  ;;  %1016 = vmatprep.subr.bf16.mxu1 %v1117_v1 }
  0x9c   :  { %v383_v34 = vpop.permute.xlu1 %382  ;;  %977 = vmatmul.mubr.bf16.gmra.mrb[4].mxu1 %v1106_v33 }
  0x9d   :  { %997 = vmatpush3.bf16.msra.mxu0 %v383_v34  ;;  %v532_v35 = vpop.permute.xlu0 %531  ;;  %1017 = vmatpush3.bf16.msra.mxu1 %v524_v25 }
  0x9e   :  { %998 = vmatprep.subr.bf16.mxu0 %v1117_v1  ;;  %1018 = vmatprep.subr.bf16.mxu1 %v1117_v1 }
  0x9f   :  { %980 = vmatprep.mubr.msk.bf16.mxu1 %vm1119_vm0, %v1117_v1 }
  0xa0   :  { %v385_v36 = vpop.permute.xlu1 %384 }
  0xa1   :  { %999 = vmatpush3.bf16.msra.mxu0 %v385_v36  ;;  %v534_v38 = vpop.permute.xlu0 %533  ;;  %1019 = vmatpush3.bf16.msra.mxu1 %v526_v27 }
  0xa2   :  { %1040 = vmatprep.subr.bf16.mxu0 %v1117_v1  ;;  %1020 = vmatprep.subr.bf16.mxu1 %v1117_v1 }
  0xa4   :  { %1001 = vmatmul.mubr.bf16.vlgmr.msra.gmra.mrb[12].mxu0 %v1107_v37  ;;  %981 = vmatmul.mubr.bf16.gmra.mrb[8].mxu1 %v1108_v39  ;;  %v671_v41 = vpop.permute.xlu1 %670 }
  0xa5   :  { %v669_v40 = vpop.permute.xlu0 %668  ;;  %1004 = vmatprep.mubr.msk.bf16.mxu0 %vm1119_vm0, %v1117_v1  ;;  %1021 = vmatpush3.bf16.msra.mxu1 %v528_v30 }
  0xa6   :  { %1041 = vmatpush3.bf16.msra.mxu0 %v669_v40  ;;  %1022 = vmatprep.subr.bf16.mxu1 %v1117_v1 }
  0xa7   :  { %1042 = vmatprep.subr.bf16.mxu0 %v1117_v1  ;;  %1028 = vmatprep.mubr.msk.bf16.mxu1 %vm1119_vm0, %v1117_v1 }
  0xa8   :  { %v675_v44 = vpop.permute.xlu1 %674 }
  0xa9   :  { %1023 = vmatpush3.bf16.msra.mxu1 %v530_v32  ;;  %v673_v43 = vpop.permute.xlu0 %672 }
  0xaa   :  { %1043 = vmatpush3.bf16.msra.mxu0 %v671_v41  ;;  %1024 = vmatprep.subr.bf16.mxu1 %v1117_v1 }
  0xab   :  { %1044 = vmatprep.subr.bf16.mxu0 %v1117_v1 }
  0xac   :  { %1005 = vmatmul.mubr.bf16.gmra.mrb[16].mxu0 %v1109_v42  ;;  %v679_v48 = vpop.permute.xlu1 %678 }
  0xad   :  { %1008 = vmatprep.mubr.msk.bf16.mxu0 %vm1119_vm0, %v1117_v1  ;;  %1025 = vmatpush3.bf16.msra.mxu1 %v532_v35  ;;  %v677_v47 = vpop.permute.xlu0 %676 }
  0xae   :  { %1045 = vmatpush3.bf16.msra.mxu0 %v673_v43  ;;  %1026 = vmatprep.subr.bf16.mxu1 %v1117_v1 }
  0xaf   :  { %1046 = vmatprep.subr.bf16.mxu0 %v1117_v1 }
  0xb0   :  { %v683_v51 = vpop.permute.xlu1 %682 }
  0xb1   :  { %1027 = vmatpush3.bf16.msra.mxu1 %v534_v38  ;;  %v681_v50 = vpop.permute.xlu0 %680 }
  0xb2   :  { %1047 = vmatpush3.bf16.msra.mxu0 %v675_v44  ;;  %1068 = vmatprep.subr.bf16.mxu1 %v1117_v1 }
  0xb3   :  { %1048 = vmatprep.subr.bf16.mxu0 %v1117_v1 }
  0xb4   :  { %1009 = vmatmul.mubr.bf16.gmra.mrb[20].mxu0 %v1110_v45  ;;  %1029 = vmatmul.mubr.bf16.vlgmr.msra.gmra.mrb[12].mxu1 %v1111_v46 }
  0xb5   :  { %1056 = vmatprep.mubr.msk.bf16.mxu0 %vm1119_vm0, %v1117_v1  ;;  %1076 = vmatpush3.bf16.msra.mxu1 %v669_v40 }
  0xb6   :  { %1049 = vmatpush3.bf16.msra.mxu0 %v677_v47  ;;  %1069 = vmatprep.subr.bf16.mxu1 %v1117_v1 }
  0xb7   :  { %1032 = vmatprep.mubr.msk.bf16.mxu1 %vm1119_vm0, %v1117_v1  ;;  %1050 = vmatprep.subr.bf16.mxu0 %v1117_v1 }
  0xb9   :  { %1077 = vmatpush3.bf16.msra.mxu1 %v671_v41 }
  0xba   :  { %1051 = vmatpush3.bf16.msra.mxu0 %v679_v48  ;;  %1070 = vmatprep.subr.bf16.mxu1 %v1117_v1 }
  0xbb   :  { %1052 = vmatprep.subr.bf16.mxu0 %v1117_v1 }
  0xbc   :  { %1033 = vmatmul.mubr.bf16.gmra.mrb[16].mxu1 %v1112_v49 }
  0xbd   :  { %1078 = vmatpush3.bf16.msra.mxu1 %v673_v43  ;;  %1036 = vmatprep.mubr.msk.bf16.mxu1 %vm1119_vm0, %v1117_v1 }
  0xbe   :  { %1053 = vmatpush3.bf16.msra.mxu0 %v681_v50  ;;  %1071 = vmatprep.subr.bf16.mxu1 %v1117_v1 }
  0xbf   :  { %1054 = vmatprep.subr.bf16.mxu0 %v1117_v1 }
  0xc1   :  { %1079 = vmatpush3.bf16.msra.mxu1 %v675_v44 }
  0xc2   :  { %1055 = vmatpush3.bf16.msra.mxu0 %v683_v51  ;;  %1072 = vmatprep.subr.bf16.mxu1 %v1117_v1 }
  0xc4   :  { %1037 = vmatmul.mubr.bf16.gmra.mrb[20].mxu1 %v1113_v52 }
  0xc5   :  { %1057 = vmatmul.mubr.bf16.vlgmr.msra.gmra.mrb[24].mxu0 %v1114_v53  ;;  %1080 = vmatpush3.bf16.msra.mxu1 %v677_v47 }
  0xc6   :  { %1060 = vmatprep.mubr.msk.bf16.mxu1 %vm1119_vm0, %v1117_v1  ;;  %1073 = vmatprep.subr.bf16.mxu1 %v1117_v1 }
  0xc9   :  { %1081 = vmatpush3.bf16.msra.mxu1 %v679_v48 }
  0xca   :  { %1074 = vmatprep.subr.bf16.mxu1 %v1117_v1 }
  0xcd   :  { %1082 = vmatpush3.bf16.msra.mxu1 %v681_v50 }
  0xce   :  { %1075 = vmatprep.subr.bf16.mxu1 %v1117_v1 }
  0xd1   :  { %1083 = vmatpush3.bf16.msra.mxu1 %v683_v51 }
  0xd4   :  { %1061 = vmatmul.mubr.bf16.vlgmr.msra.gmra.mrb[24].mxu1 %v1115_v54 }
  0xd5   :  { %1064 = vmatprep.mubr.msk.bf16.mxu1 %vm1119_vm0, %v1117_v1 }
  0xdc   :  { %1065 = vmatmul.mubr.bf16.gmra.mrb[28].mxu1 %v1116_v55 }
  0xf5   :  { %v154_v57 = vpop.f32.mrb[0].mxu0 }
  0xf6   :  { %v177_v59 = vadd.f32 %v154_v57, %v42_v56  ;;  %v946_v60 = vpop.f32.mrb[1].mxu0 }
  0xf7   :  { %v157_v61 = vpop.f32.mrb[2].mxu0 }
  0xf8   :  { %184 = vst.msk [vmem:[#allocation2] sm:$0xff] %vm183_vm2, %v177_v59  ;;  %v178_v62 = vadd.f32 %v157_v61, %v43_v58  ;;  %v947_v63 = vpop.f32.mrb[3].mxu0 }
  0xfa   :  { %185 = vst.msk [vmem:[#allocation2 + $0x8] sm:$0xff] %vm183_vm2, %v178_v62 }
  0xfd   :  { %v162_v1 = vpop.f32.mrb[4].mxu0 }
  0xfe   :  { %v179_v3 = vadd.f32 %v162_v1, %v44_v0  ;;  %v950_v4 = vpop.f32.mrb[5].mxu0 }
  0xff   :  { %v165_v5 = vpop.f32.mrb[6].mxu0  ;;  %v190_v1 = vld [vmem:[#allocation2] sm:$0xff] }
 0x100   :  { %186 = vst.msk [vmem:[#allocation2 + $0x10] sm:$0xff] %vm183_vm2, %v179_v3  ;;  %v180_v6 = vadd.f32 %v165_v5, %v45_v2  ;;  %v951_v7 = vpop.f32.mrb[7].mxu0 }
 0x101   :  { %v191_v4 = vld [vmem:[#allocation2 + $0x8] sm:$0xff] }
 0x102   :  { %187 = vst.msk [vmem:[#allocation2 + $0x18] sm:$0xff] %vm183_vm2, %v180_v6 }
 0x105   :  { %v170_v9 = vpop.f32.mrb[8].mxu0 }
 0x106   :  { %v181_v11 = vadd.f32 %v170_v9, %v46_v8  ;;  %v954_v12 = vpop.f32.mrb[9].mxu0 }
 0x107   :  { %v173_v13 = vpop.f32.mrb[10].mxu0  ;;  %v192_v12 = vld [vmem:[#allocation2 + $0x10] sm:$0xff] }
 0x108   :  { %188 = vst.msk [vmem:[#allocation2 + $0x20] sm:$0xff] %vm183_vm2, %v181_v11  ;;  %v182_v14 = vadd.f32 %v173_v13, %v47_v10  ;;  %v955_v15 = vpop.f32.mrb[11].mxu0 }
 0x109   :  { %v193_v15 = vld [vmem:[#allocation2 + $0x18] sm:$0xff] }
 0x10a   :  { %189 = vst.msk [vmem:[#allocation2 + $0x28] sm:$0xff] %vm183_vm2, %v182_v14 }
 0x167   :  { %v279_v16 = vpop.f32.mrb[0].mxu1 }
 0x168   :  { %308 = vrot.lane.b32.xlu0 %v279_v16, %s1123_s0  ;;  %v974_v17 = vpop.f32.mrb[1].mxu1 }
 0x169   :  { %v282_v18 = vpop.f32.mrb[2].mxu1 }
 0x16a   :  { %310 = vrot.lane.b32.xlu1 %v282_v18, %s1123_s0  ;;  %v975_v19 = vpop.f32.mrb[3].mxu1  ;;  %v194_v18 = vld [vmem:[#allocation2 + $0x20] sm:$0xff] }
 0x16f   :  { %v287_v20 = vpop.f32.mrb[4].mxu1 }
 0x170   :  { %v978_v21 = vpop.f32.mrb[5].mxu1 }
 0x171   :  { %v290_v22 = vpop.f32.mrb[6].mxu1  ;;  %v195_v21 = vld [vmem:[#allocation2 + $0x28] sm:$0xff] }
 0x172   :  { %v979_v23 = vpop.f32.mrb[7].mxu1 }
 0x177   :  { %v428_v24 = vpop.f32.mrb[12].mxu0  ;;  %v295_v26 = vpop.f32.mrb[8].mxu1 }
 0x178   :  { %457 = vrot.lane.b32.xlu0 %v428_v24, %s1124_s6  ;;  %v1002_v25 = vpop.f32.mrb[13].mxu0  ;;  %v982_v28 = vpop.f32.mrb[9].mxu1 }
 0x179   :  { %v431_v27 = vpop.f32.mrb[14].mxu0  ;;  %v298_v29 = vpop.f32.mrb[10].mxu1 }
 0x17a   :  { %459 = vrot.lane.b32.xlu1 %v431_v27, %s1124_s6  ;;  %v1003_v30 = vpop.f32.mrb[15].mxu0  ;;  %v983_v31 = vpop.f32.mrb[11].mxu1 }
 0x17c   :  { %312 = vrot.lane.b32.xlu0 %v287_v20, %s1123_s0 }
 0x17e   :  { %314 = vrot.lane.b32.xlu1 %v290_v22, %s1123_s0 }
 0x17f   :  { %v436_v32 = vpop.f32.mrb[16].mxu0 }
 0x180   :  { %316 = vrot.lane.b32.xlu0 %v295_v26, %s1123_s0  ;;  %v1006_v33 = vpop.f32.mrb[17].mxu0 }
 0x181   :  { %v439_v34 = vpop.f32.mrb[18].mxu0 }
 0x182   :  { %318 = vrot.lane.b32.xlu1 %v298_v29, %s1123_s0  ;;  %v1007_v35 = vpop.f32.mrb[19].mxu0 }
 0x184   :  { %461 = vrot.lane.b32.xlu0 %v436_v32, %s1124_s6 }
 0x186   :  { %463 = vrot.lane.b32.xlu1 %v439_v34, %s1124_s6 }
 0x187   :  { %v444_v36 = vpop.f32.mrb[20].mxu0  ;;  %v577_v37 = vpop.f32.mrb[12].mxu1 }
 0x188   :  { %465 = vrot.lane.b32.xlu0 %v444_v36, %s1124_s6  ;;  %v1010_v38 = vpop.f32.mrb[21].mxu0  ;;  %v1030_v39 = vpop.f32.mrb[13].mxu1 }
 0x189   :  { %v447_v40 = vpop.f32.mrb[22].mxu0  ;;  %v580_v41 = vpop.f32.mrb[14].mxu1 }
 0x18a   :  { %467 = vrot.lane.b32.xlu1 %v447_v40, %s1124_s6  ;;  %v1011_v42 = vpop.f32.mrb[23].mxu0  ;;  %v1031_v43 = vpop.f32.mrb[15].mxu1 }
 0x18c   :  { %606 = vrot.lane.b32.xlu0 %v577_v37, %s1125_s7 }
 0x18e   :  { %608 = vrot.lane.b32.xlu1 %v580_v41, %s1125_s7 }
 0x18f   :  { %v585_v44 = vpop.f32.mrb[16].mxu1 }
 0x190   :  { %v1034_v45 = vpop.f32.mrb[17].mxu1  ;;  %610 = vrot.lane.b32.xlu0 %v585_v44, %s1125_s7 }
 0x191   :  { %v588_v46 = vpop.f32.mrb[18].mxu1 }
 0x192   :  { %612 = vrot.lane.b32.xlu1 %v588_v46, %s1125_s7  ;;  %v1035_v47 = vpop.f32.mrb[19].mxu1 }
 0x197   :  { %v593_v48 = vpop.f32.mrb[20].mxu1 }
 0x198   :  { %v726_v49 = vpop.f32.mrb[24].mxu0  ;;  %v1038_v50 = vpop.f32.mrb[21].mxu1  ;;  %614 = vrot.lane.b32.xlu0 %v593_v48, %s1125_s7 }
 0x199   :  { %v1058_v51 = vpop.f32.mrb[25].mxu0  ;;  %v596_v52 = vpop.f32.mrb[22].mxu1 }
 0x19a   :  { %v729_v53 = vpop.f32.mrb[26].mxu0  ;;  %616 = vrot.lane.b32.xlu1 %v596_v52, %s1125_s7  ;;  %v1039_v54 = vpop.f32.mrb[23].mxu1 }
 0x19b   :  { %v1059_v55 = vpop.f32.mrb[27].mxu0 }
 0x19c   :  { %755 = vrot.lane.b32.xlu0 %v726_v49, %s1126_s8 }
 0x19e   :  { %757 = vrot.lane.b32.xlu1 %v729_v53, %s1126_s8 }
 0x1a7   :  { %v734_v56 = vpop.f32.mrb[24].mxu1 }
 0x1a8   :  { %v1062_v57 = vpop.f32.mrb[25].mxu1  ;;  %759 = vrot.lane.b32.xlu0 %v734_v56, %s1126_s8 }
 0x1a9   :  { %v737_v58 = vpop.f32.mrb[26].mxu1 }
 0x1aa   :  { %v1063_v59 = vpop.f32.mrb[27].mxu1  ;;  %761 = vrot.lane.b32.xlu1 %v737_v58, %s1126_s8 }
 0x1af   :  { %v742_v60 = vpop.f32.mrb[28].mxu1 }
 0x1b0   :  { %v1066_v61 = vpop.f32.mrb[29].mxu1  ;;  %763 = vrot.lane.b32.xlu0 %v742_v60, %s1126_s8  ;;  %v872_v60 = vld [vmem:[%s1394_s2] ss:$0 sm:$0xff] }
 0x1b1   :  { %v745_v62 = vpop.f32.mrb[30].mxu1 }
 0x1b2   :  { %v1067_v63 = vpop.f32.mrb[31].mxu1  ;;  %765 = vrot.lane.b32.xlu1 %v745_v62, %s1126_s8 }
 0x1da   :  { %v309_v0 = vpop.permute.xlu0 %308 }
 0x1db   :  { %v326_v2 = vadd.f32 %v309_v0, %v190_v1 }
 0x1dc   :  { %v311_v3 = vpop.permute.xlu1 %310 }
 0x1dd   :  { %333 = vst.msk [vmem:[#allocation2] sm:$0xff] %vm332_vm3, %v326_v2  ;;  %v327_v5 = vadd.f32 %v311_v3, %v191_v4 }
 0x1df   :  { %334 = vst.msk [vmem:[#allocation2 + $0x8] sm:$0xff] %vm332_vm3, %v327_v5 }
 0x1e4   :  { %v339_v6 = vld [vmem:[#allocation2] sm:$0xff] }
 0x1e6   :  { %v340_v9 = vld [vmem:[#allocation2 + $0x8] sm:$0xff] }
 0x1ea   :  { %v458_v7 = vpop.permute.xlu0 %457 }
 0x1eb   :  { %v475_v8 = vadd.f32 %v458_v7, %v339_v6 }
 0x1ec   :  { %v460_v10 = vpop.permute.xlu1 %459 }
 0x1ed   :  { %482 = vst.msk [vmem:[#allocation2] sm:$0xff] %vm481_vm4, %v475_v8  ;;  %v476_v11 = vadd.f32 %v460_v10, %v340_v9 }
 0x1ee   :  { %v313_v13 = vpop.permute.xlu0 %312 }
 0x1ef   :  { %483 = vst.msk [vmem:[#allocation2 + $0x8] sm:$0xff] %vm481_vm4, %v476_v11  ;;  %v328_v14 = vadd.f32 %v313_v13, %v192_v12 }
 0x1f0   :  { %v315_v16 = vpop.permute.xlu1 %314 }
 0x1f1   :  { %335 = vst.msk [vmem:[#allocation2 + $0x10] sm:$0xff] %vm332_vm3, %v328_v14  ;;  %v329_v17 = vadd.f32 %v315_v16, %v193_v15 }
 0x1f2   :  { %v317_v19 = vpop.permute.xlu0 %316 }
 0x1f3   :  { %336 = vst.msk [vmem:[#allocation2 + $0x18] sm:$0xff] %vm332_vm3, %v329_v17  ;;  %v330_v20 = vadd.f32 %v317_v19, %v194_v18 }
 0x1f4   :  { %v319_v22 = vpop.permute.xlu1 %318  ;;  %v488_v35 = vld [vmem:[#allocation2] sm:$0xff] }
 0x1f5   :  { %337 = vst.msk [vmem:[#allocation2 + $0x20] sm:$0xff] %vm332_vm3, %v330_v20  ;;  %v331_v23 = vadd.f32 %v319_v22, %v195_v21 }
 0x1f6   :  { %v462_v24 = vpop.permute.xlu0 %461  ;;  %v489_v39 = vld [vmem:[#allocation2 + $0x8] sm:$0xff] }
 0x1f7   :  { %338 = vst.msk [vmem:[#allocation2 + $0x28] sm:$0xff] %vm332_vm3, %v331_v23 }
 0x1f8   :  { %v341_v25 = vld [vmem:[#allocation2 + $0x10] sm:$0xff]  ;;  %v464_v26 = vpop.permute.xlu1 %463 }
 0x1f9   :  { %v477_v27 = vadd.f32 %v462_v24, %v341_v25 }
 0x1fa   :  { %v342_v28 = vld [vmem:[#allocation2 + $0x18] sm:$0xff]  ;;  %v466_v29 = vpop.permute.xlu0 %465 }
 0x1fb   :  { %484 = vst.msk [vmem:[#allocation2 + $0x10] sm:$0xff] %vm481_vm4, %v477_v27  ;;  %v478_v30 = vadd.f32 %v464_v26, %v342_v28 }
 0x1fc   :  { %v343_v31 = vld [vmem:[#allocation2 + $0x20] sm:$0xff]  ;;  %v468_v32 = vpop.permute.xlu1 %467 }
 0x1fd   :  { %485 = vst.msk [vmem:[#allocation2 + $0x18] sm:$0xff] %vm481_vm4, %v478_v30  ;;  %v479_v33 = vadd.f32 %v466_v29, %v343_v31 }
 0x1fe   :  { %v344_v34 = vld [vmem:[#allocation2 + $0x28] sm:$0xff]  ;;  %v607_v36 = vpop.permute.xlu0 %606 }
 0x1ff   :  { %486 = vst.msk [vmem:[#allocation2 + $0x20] sm:$0xff] %vm481_vm4, %v479_v33  ;;  %v480_v37 = vadd.f32 %v468_v32, %v344_v34  ;;  %v624_v38 = vadd.f32 %v607_v36, %v488_v35 }
 0x200   :  { %v609_v40 = vpop.permute.xlu1 %608 }
 0x201   :  { %487 = vst.msk [vmem:[#allocation2 + $0x28] sm:$0xff] %vm481_vm4, %v480_v37  ;;  %v625_v41 = vadd.f32 %v609_v40, %v489_v39 }
 0x202   :  { %631 = vst.msk [vmem:[#allocation2] sm:$0xff] %vm630_vm5, %v624_v38  ;;  %v490_v42 = vld [vmem:[#allocation2 + $0x10] sm:$0xff]  ;;  %v611_v43 = vpop.permute.xlu0 %610 }
 0x203   :  { %632 = vst.msk [vmem:[#allocation2 + $0x8] sm:$0xff] %vm630_vm5, %v625_v41  ;;  %v626_v44 = vadd.f32 %v611_v43, %v490_v42 }
 0x204   :  { %v491_v45 = vld [vmem:[#allocation2 + $0x18] sm:$0xff]  ;;  %v613_v46 = vpop.permute.xlu1 %612 }
 0x205   :  { %633 = vst.msk [vmem:[#allocation2 + $0x10] sm:$0xff] %vm630_vm5, %v626_v44  ;;  %v627_v47 = vadd.f32 %v613_v46, %v491_v45 }
 0x206   :  { %v492_v48 = vld [vmem:[#allocation2 + $0x20] sm:$0xff] }
 0x207   :  { %634 = vst.msk [vmem:[#allocation2 + $0x18] sm:$0xff] %vm630_vm5, %v627_v47 }
 0x208   :  { %v493_v51 = vld [vmem:[#allocation2 + $0x28] sm:$0xff] }
 0x209   :  { %v637_v54 = vld [vmem:[#allocation2] sm:$0xff] }
 0x20a   :  { %v615_v49 = vpop.permute.xlu0 %614  ;;  %v638_v57 = vld [vmem:[#allocation2 + $0x8] sm:$0xff] }
 0x20b   :  { %v628_v50 = vadd.f32 %v615_v49, %v492_v48 }
 0x20c   :  { %v617_v52 = vpop.permute.xlu1 %616  ;;  %v639_v0 = vld [vmem:[#allocation2 + $0x10] sm:$0xff] }
 0x20d   :  { %635 = vst.msk [vmem:[#allocation2 + $0x20] sm:$0xff] %vm630_vm5, %v628_v50  ;;  %v629_v53 = vadd.f32 %v617_v52, %v493_v51 }
 0x20e   :  { %v756_v55 = vpop.permute.xlu0 %755  ;;  %v640_v5 = vld [vmem:[#allocation2 + $0x18] sm:$0xff] }
 0x20f   :  { %636 = vst.msk [vmem:[#allocation2 + $0x28] sm:$0xff] %vm630_vm5, %v629_v53  ;;  %v773_v56 = vadd.f32 %v756_v55, %v637_v54 }
 0x210   :  { %v758_v58 = vpop.permute.xlu1 %757 }
 0x211   :  { %780 = vst.msk [vmem:[#allocation2] sm:$0xff] %vm779_vm6, %v773_v56  ;;  %v774_v59 = vadd.f32 %v758_v58, %v638_v57 }
 0x213   :  { %781 = vst.msk [vmem:[#allocation2 + $0x8] sm:$0xff] %vm779_vm6, %v774_v59 }
 0x214   :  { %v641_v9 = vld [vmem:[#allocation2 + $0x20] sm:$0xff] }
 0x216   :  { %v642_v13 = vld [vmem:[#allocation2 + $0x28] sm:$0xff] }
 0x218   :  { %v789_v61 = vld [vmem:[#allocation2] sm:$0xff] }
 0x219   :  { %v795_v62 = vmax.f32 %v789_v61, 0.0 }
 0x21a   :  { %v790_v63 = vld [vmem:[#allocation2 + $0x8] sm:$0xff]  ;;  %v760_v1 = vpop.permute.xlu0 %759 }
 0x21b   :  { %v808_v2 = vadd.f32 %v872_v60, %v795_v62  ;;  %v796_v3 = vmax.f32 %v790_v63, 0.0  ;;  %v775_v4 = vadd.f32 %v760_v1, %v639_v0 }
 0x21c   :  { %v762_v6 = vpop.permute.xlu1 %761 }
 0x21d   :  { %815 = vst.msk [vmem:[%s1395_s3] sm:$0xff] %vm19_vm1, %v808_v2  ;;  %v809_v7 = vadd.f32 %v872_v60, %v796_v3  ;;  %v776_v8 = vadd.f32 %v762_v6, %v640_v5 }
 0x21e   :  { %782 = vst.msk [vmem:[#allocation2 + $0x10] sm:$0xff] %vm779_vm6, %v775_v4 }
 0x21f   :  { %816 = vst.msk [vmem:[%s1395_s3 + $0x8] sm:$0xff] %vm19_vm1, %v809_v7 }
 0x220   :  { %783 = vst.msk [vmem:[#allocation2 + $0x18] sm:$0xff] %vm779_vm6, %v776_v8 }
 0x222   :  { %v764_v10 = vpop.permute.xlu0 %763 }
 0x223   :  { %v777_v11 = vadd.f32 %v764_v10, %v641_v9 }
 0x224   :  { %v766_v14 = vpop.permute.xlu1 %765 }
 0x225   :  { %v791_v12 = vld [vmem:[#allocation2 + $0x10] sm:$0xff]  ;;  %784 = vst.msk [vmem:[#allocation2 + $0x20] sm:$0xff] %vm779_vm6, %v777_v11  ;;  %v778_v16 = vadd.f32 %v766_v14, %v642_v13 }
 0x226   :  { %v797_v15 = vmax.f32 %v791_v12, 0.0 }
 0x227   :  { %v792_v17 = vld [vmem:[#allocation2 + $0x18] sm:$0xff]  ;;  %785 = vst.msk [vmem:[#allocation2 + $0x28] sm:$0xff] %vm779_vm6, %v778_v16 }
 0x228   :  { %v810_v18 = vadd.f32 %v872_v60, %v797_v15  ;;  %v798_v19 = vmax.f32 %v792_v17, 0.0 }
 0x22a   :  { %817 = vst.msk [vmem:[%s1395_s3 + $0x10] sm:$0xff] %vm19_vm1, %v810_v18  ;;  %v811_v20 = vadd.f32 %v872_v60, %v798_v19 }
 0x22c   :  { %818 = vst.msk [vmem:[%s1395_s3 + $0x18] sm:$0xff] %vm19_vm1, %v811_v20  ;;  %v793_v21 = vld [vmem:[#allocation2 + $0x20] sm:$0xff] }
 0x22d   :  { %v799_v22 = vmax.f32 %v793_v21, 0.0 }
 0x22e   :  { %v794_v23 = vld [vmem:[#allocation2 + $0x28] sm:$0xff] }
 0x22f   :  { %v812_v24 = vadd.f32 %v872_v60, %v799_v22  ;;  %v800_v25 = vmax.f32 %v794_v23, 0.0 }
 0x231   :  { %819 = vst.msk [vmem:[%s1395_s3 + $0x20] sm:$0xff] %vm19_vm1, %v812_v24  ;;  %v813_v26 = vadd.f32 %v872_v60, %v800_v25 }
 0x233   :  { %820 = vst.msk [vmem:[%s1395_s3 + $0x28] sm:$0xff] %vm19_vm1, %v813_v26 }

// kernel: stack_gcn_encoder.6
= control target key start
LH: loop header
LB: loop body
LE: loop exit
PB: predicated region body
PF: predicated region fallthrough
CT: control target
= control target key end

     0   :  { %s1271_s16 = smov 120   ;;  %s1272_s4 = smov 112   ;;  %vm19_vm0 = vcmask 326656   ;;  %v1275_v14 = vmov 0.0   ;;  %vm205_vm1 = vcmask 64512   ;;  %vm384_vm2 = vcmask 130112   ;;  %s1507_s1 = inlined_call_operand.vmem [shape: bf16[128,40], index: 1, kind: input, shape index: {}]   ;;  %s1508_s0 = inlined_call_operand.vmem [shape: bf16[5,64,128], index: 0, kind: input, shape index: {}]   ;;  %s1509_s2 = inlined_call_operand.vmem [shape: f32[1,40], index: 2, kind: input, shape index: {}]   ;;  %s1510_s3 = inlined_call_operand.vmem [shape: f32[64,40], index: 3, kind: output, shape index: {}]  }
   0x1   :  { %v1303_v0 = vld [vmem:[%s1507_s1] sm:$0xff]   ;;  %v1308_v1 = vld [vmem:[%s1507_s1 + $0x10] sm:$0xff]   ;;  %v1245_v2 = vld [vmem:[%s1507_s1 + $0x8] sm:$0xff]   ;;  %s1273_s7 = smov 104   ;;  %s1274_s15 = smov 96   ;;  %22 = vst.msk [vmem:[#allocation2 + $0x10] sm:$0xff] %vm19_vm0, %v1275_v14 }
   0x2   :  { %255 = vrot.lane.b32.xlu0 %v1303_v0, %s1271_s16  ;;  %1098 = vmatprep.subr.bf16.mxu0 %v1303_v0  ;;  %v1246_v3 = vld [vmem:[%s1507_s1 + $0x18] sm:$0xff]   ;;  %v1247_v4 = vld [vmem:[%s1507_s1 + $0x20] sm:$0xff]   ;;  %v1248_v5 = vld [vmem:[%s1507_s1 + $0x28] sm:$0xff]   ;;  %20 = vst.msk [vmem:[#allocation2] sm:$0xff] %vm19_vm0, %v1275_v14  ;;  %s1278_s17 = smov 24   ;;  %s1279_s18 = smov 32  }
   0x3   :  { %259 = vrot.lane.b32.xlu1 %v1308_v1, %s1271_s16  ;;  %1099 = vmatpush3.bf16.msra.mxu0 %v1303_v0  ;;  %v1249_v6 = vld [vmem:[%s1507_s1 + $0x30] sm:$0xff]   ;;  %v1251_v7 = vld [vmem:[%s1508_s0] sm:$0xff]   ;;  %v1250_v8 = vld [vmem:[%s1507_s1 + $0x38] sm:$0xff]   ;;  %21 = vst.msk [vmem:[#allocation2 + $0x8] sm:$0xff] %vm19_vm0, %v1275_v14  ;;  %vm563_vm3 = vcmask 195712   ;;  %vm742_vm4 = vcmask 261312  }
   0x4   :  { %1100 = vmatprep.subr.bf16.mxu0 %v1245_v2  ;;  %1114 = vmatprep.mubr.bf16.mxu0 %v1251_v7  ;;  %v1253_v9 = vld [vmem:[%s1508_s0 + $0x20] sm:$0xff]   ;;  %v1252_v10 = vld [vmem:[%s1508_s0 + $0x8] sm:$0xff]   ;;  %v1255_v11 = vld [vmem:[%s1508_s0 + $0x10] sm:$0xff]   ;;  %23 = vst.msk [vmem:[#allocation2 + $0x18] sm:$0xff] %vm19_vm0, %v1275_v14  ;;  %vm921_vm5 = vcmask 326912  }
   0x5   :  { %1138 = vmatprep.mubr.bf16.mxu1 %v1253_v9  ;;  %v1256_v12 = vld [vmem:[%s1508_s0 + $0x18] sm:$0xff]   ;;  %v1257_v13 = vld [vmem:[%s1508_s0 + $0x40] sm:$0xff]   ;;  %24 = vst.msk [vmem:[#allocation2 + $0x20] sm:$0xff] %vm19_vm0, %v1275_v14  ;;  %25 = vst.msk [vmem:[#allocation2 + $0x28] sm:$0xff] %vm19_vm0, %v1275_v14 }
   0x6   :  { %257 = vrot.lane.b32.xlu0 %v1245_v2, %s1271_s16  ;;  %26 = vst.msk [vmem:[#allocation2 + $0x30] sm:$0xff] %vm19_vm0, %v1275_v14  ;;  %27 = vst.msk [vmem:[#allocation2 + $0x38] sm:$0xff] %vm19_vm0, %v1275_v14  ;;  %v1254_v31 = vld [vmem:[%s1508_s0 + $0x28] sm:$0xff]   ;;  %v1259_v32 = vld [vmem:[%s1508_s0 + $0x30] sm:$0xff]  }
   0x7   :  { %261 = vrot.lane.b32.xlu1 %v1246_v3, %s1271_s16  ;;  %1101 = vmatpush3.bf16.msra.mxu0 %v1245_v2  ;;  %v1260_v37 = vld [vmem:[%s1508_s0 + $0x38] sm:$0xff]   ;;  %v1263_v38 = vld [vmem:[%s1508_s0 + $0x60] sm:$0xff]   ;;  %v1258_v43 = vld [vmem:[%s1508_s0 + $0x48] sm:$0xff]  }
   0x8   :  { %1102 = vmatprep.subr.bf16.mxu0 %v1308_v1  ;;  %v1261_v45 = vld [vmem:[%s1508_s0 + $0x50] sm:$0xff]   ;;  %v1262_v48 = vld [vmem:[%s1508_s0 + $0x58] sm:$0xff]   ;;  %v1265_v50 = vld [vmem:[%s1508_s0 + $0x80] sm:$0xff]  }
   0x9   :  { %v1264_v52 = vld [vmem:[%s1508_s0 + $0x68] sm:$0xff]   ;;  %v1267_v54 = vld [vmem:[%s1508_s0 + $0x70] sm:$0xff]   ;;  %v1268_v56 = vld [vmem:[%s1508_s0 + $0x78] sm:$0xff]  }
   0xa   :  { %263 = vrot.lane.b32.xlu0 %v1247_v4, %s1271_s16  ;;  %v1269_v58 = vld [vmem:[%s1508_s0 + $0x90] sm:$0xff]   ;;  %v1266_v59 = vld [vmem:[%s1508_s0 + $0x88] sm:$0xff]   ;;  %v1270_v60 = vld [vmem:[%s1508_s0 + $0x98] sm:$0xff]   ;;  %s1276_s0 = smov 8  }
   0xb   :  { %265 = vrot.lane.b32.xlu1 %v1248_v5, %s1271_s16  ;;  %1103 = vmatpush3.bf16.msra.mxu0 %v1308_v1  ;;  %v46_v61 = vld [vmem:[#allocation2 + $0x10] sm:$0xff]  ;;  %v44_v62 = vld [vmem:[#allocation2] sm:$0xff] }
   0xc   :  { %1104 = vmatprep.subr.bf16.mxu0 %v1246_v3 }
   0xd   :  { %v50_v9 = vld [vmem:[#allocation2 + $0x30] sm:$0xff] }
   0xe   :  { %267 = vrot.lane.b32.xlu0 %v1249_v6, %s1271_s16 }
   0xf   :  { %269 = vrot.lane.b32.xlu1 %v1250_v8, %s1271_s16  ;;  %1105 = vmatpush3.bf16.msra.mxu0 %v1246_v3  ;;  %s1277_s16 = smov 16  }
  0x10   :  { %1106 = vmatprep.subr.bf16.mxu0 %v1247_v4 }
  0x12   :  { %434 = vrot.lane.b32.xlu0 %v1303_v0, %s1272_s4 }
  0x13   :  { %613 = vrot.lane.b32.xlu1 %v1303_v0, %s1273_s7  ;;  %1107 = vmatpush3.bf16.msra.mxu0 %v1247_v4 }
  0x14   :  { %1108 = vmatprep.subr.bf16.mxu0 %v1248_v5 }
  0x16   :  { %436 = vrot.lane.b32.xlu0 %v1245_v2, %s1272_s4 }
  0x17   :  { %615 = vrot.lane.b32.xlu1 %v1245_v2, %s1273_s7  ;;  %1109 = vmatpush3.bf16.msra.mxu0 %v1248_v5 }
  0x18   :  { %1110 = vmatprep.subr.bf16.mxu0 %v1249_v6 }
  0x1a   :  { %438 = vrot.lane.b32.xlu0 %v1308_v1, %s1272_s4 }
  0x1b   :  { %617 = vrot.lane.b32.xlu1 %v1308_v1, %s1273_s7  ;;  %1111 = vmatpush3.bf16.msra.mxu0 %v1249_v6 }
  0x1c   :  { %1112 = vmatprep.subr.bf16.mxu0 %v1250_v8 }
  0x1e   :  { %440 = vrot.lane.b32.xlu0 %v1246_v3, %s1272_s4 }
  0x1f   :  { %619 = vrot.lane.b32.xlu1 %v1246_v3, %s1273_s7  ;;  %1113 = vmatpush3.bf16.msra.mxu0 %v1250_v8 }
  0x22   :  { %442 = vrot.lane.b32.xlu0 %v1247_v4, %s1272_s4  ;;  %1115 = vmatmul.mubr.bf16.vlgmr.msra.gmra.mrb[0].mxu0 %v1252_v10  ;;  %v48_v10 = vld [vmem:[#allocation2 + $0x20] sm:$0xff] }
  0x23   :  { %621 = vrot.lane.b32.xlu1 %v1247_v4, %s1273_s7  ;;  %1118 = vmatprep.mubr.bf16.mxu0 %v1255_v11 }
  0x26   :  { %444 = vrot.lane.b32.xlu0 %v1248_v5, %s1272_s4 }
  0x27   :  { %623 = vrot.lane.b32.xlu1 %v1248_v5, %s1273_s7 }
  0x2a   :  { %446 = vrot.lane.b32.xlu0 %v1249_v6, %s1272_s4  ;;  %1119 = vmatmul.mubr.bf16.gmra.mrb[4].mxu0 %v1256_v12  ;;  %v51_v12 = vld [vmem:[#allocation2 + $0x38] sm:$0xff] }
  0x2b   :  { %625 = vrot.lane.b32.xlu1 %v1249_v6, %s1273_s7  ;;  %1162 = vmatprep.mubr.bf16.mxu0 %v1257_v13 }
  0x2e   :  { %448 = vrot.lane.b32.xlu0 %v1250_v8, %s1272_s4 }
  0x2f   :  { %627 = vrot.lane.b32.xlu1 %v1250_v8, %s1273_s7 }
  0x32   :  { %792 = vrot.lane.b32.xlu0 %v1303_v0, %s1274_s15  ;;  %v47_v0 = vld [vmem:[#allocation2 + $0x18] sm:$0xff] }
  0x33   :  { %794 = vrot.lane.b32.xlu1 %v1245_v2, %s1274_s15 }
  0x36   :  { %796 = vrot.lane.b32.xlu0 %v1308_v1, %s1274_s15 }
  0x37   :  { %798 = vrot.lane.b32.xlu1 %v1246_v3, %s1274_s15  ;;  %v45_v3 = vld [vmem:[#allocation2 + $0x8] sm:$0xff] }
  0x3a   :  { %800 = vrot.lane.b32.xlu0 %v1247_v4, %s1274_s15 }
  0x3b   :  { %802 = vrot.lane.b32.xlu1 %v1248_v5, %s1274_s15 }
  0x3e   :  { %804 = vrot.lane.b32.xlu0 %v1249_v6, %s1274_s15 }
  0x3f   :  { %806 = vrot.lane.b32.xlu1 %v1250_v8, %s1274_s15 }
  0x74   :  { %v256_v15 = vpop.permute.xlu0 %255 }
  0x75   :  { %1122 = vmatprep.subr.bf16.mxu1 %v256_v15  ;;  %v260_v16 = vpop.permute.xlu1 %259 }
  0x76   :  { %1123 = vmatpush3.bf16.msra.mxu1 %v256_v15  ;;  %v49_v15 = vld [vmem:[#allocation2 + $0x28] sm:$0xff] }
  0x78   :  { %v258_v17 = vpop.permute.xlu0 %257 }
  0x79   :  { %1124 = vmatprep.subr.bf16.mxu1 %v258_v17  ;;  %v262_v18 = vpop.permute.xlu1 %261 }
  0x7a   :  { %1125 = vmatpush3.bf16.msra.mxu1 %v258_v17 }
  0x7b   :  { %1126 = vmatprep.subr.bf16.mxu1 %v260_v16 }
  0x7c   :  { %v264_v19 = vpop.permute.xlu0 %263 }
  0x7d   :  { %v266_v20 = vpop.permute.xlu1 %265 }
  0x7e   :  { %1127 = vmatpush3.bf16.msra.mxu1 %v260_v16 }
  0x7f   :  { %1128 = vmatprep.subr.bf16.mxu1 %v262_v18 }
  0x80   :  { %v268_v21 = vpop.permute.xlu0 %267 }
  0x81   :  { %v270_v22 = vpop.permute.xlu1 %269 }
  0x82   :  { %1129 = vmatpush3.bf16.msra.mxu1 %v262_v18 }
  0x83   :  { %1130 = vmatprep.subr.bf16.mxu1 %v264_v19 }
  0x84   :  { %v435_v23 = vpop.permute.xlu0 %434 }
  0x85   :  { %1146 = vmatprep.subr.bf16.mxu0 %v435_v23  ;;  %v614_v24 = vpop.permute.xlu1 %613 }
  0x86   :  { %1131 = vmatpush3.bf16.msra.mxu1 %v264_v19  ;;  %1147 = vmatpush3.bf16.msra.mxu0 %v435_v23 }
  0x87   :  { %1132 = vmatprep.subr.bf16.mxu1 %v266_v20 }
  0x88   :  { %v437_v25 = vpop.permute.xlu0 %436 }
  0x89   :  { %1148 = vmatprep.subr.bf16.mxu0 %v437_v25  ;;  %v616_v26 = vpop.permute.xlu1 %615 }
  0x8a   :  { %1133 = vmatpush3.bf16.msra.mxu1 %v266_v20  ;;  %1149 = vmatpush3.bf16.msra.mxu0 %v437_v25 }
  0x8b   :  { %1134 = vmatprep.subr.bf16.mxu1 %v268_v21 }
  0x8c   :  { %v439_v27 = vpop.permute.xlu0 %438 }
  0x8d   :  { %1150 = vmatprep.subr.bf16.mxu0 %v439_v27  ;;  %v618_v28 = vpop.permute.xlu1 %617 }
  0x8e   :  { %1135 = vmatpush3.bf16.msra.mxu1 %v268_v21  ;;  %1151 = vmatpush3.bf16.msra.mxu0 %v439_v27 }
  0x8f   :  { %1136 = vmatprep.subr.bf16.mxu1 %v270_v22 }
  0x90   :  { %v441_v29 = vpop.permute.xlu0 %440 }
  0x91   :  { %1152 = vmatprep.subr.bf16.mxu0 %v441_v29  ;;  %v620_v30 = vpop.permute.xlu1 %619 }
  0x92   :  { %1137 = vmatpush3.bf16.msra.mxu1 %v270_v22  ;;  %1153 = vmatpush3.bf16.msra.mxu0 %v441_v29 }
  0x93   :  { %1170 = vmatprep.subr.bf16.mxu1 %v614_v24 }
  0x94   :  { %v443_v33 = vpop.permute.xlu0 %442 }
  0x95   :  { %1139 = vmatmul.mubr.bf16.vlgmr.msra.gmra.mrb[0].mxu1 %v1254_v31  ;;  %1154 = vmatprep.subr.bf16.mxu0 %v443_v33  ;;  %v622_v34 = vpop.permute.xlu1 %621 }
  0x96   :  { %1155 = vmatpush3.bf16.msra.mxu0 %v443_v33  ;;  %1171 = vmatpush3.bf16.msra.mxu1 %v614_v24 }
  0x97   :  { %1172 = vmatprep.subr.bf16.mxu1 %v616_v26  ;;  %1142 = vmatprep.mubr.bf16.mxu1 %v1259_v32 }
  0x98   :  { %v445_v35 = vpop.permute.xlu0 %444 }
  0x99   :  { %1156 = vmatprep.subr.bf16.mxu0 %v445_v35  ;;  %v624_v36 = vpop.permute.xlu1 %623 }
  0x9a   :  { %1157 = vmatpush3.bf16.msra.mxu0 %v445_v35  ;;  %1173 = vmatpush3.bf16.msra.mxu1 %v616_v26 }
  0x9b   :  { %1174 = vmatprep.subr.bf16.mxu1 %v618_v28 }
  0x9c   :  { %v447_v39 = vpop.permute.xlu0 %446 }
  0x9d   :  { %1158 = vmatprep.subr.bf16.mxu0 %v447_v39  ;;  %v626_v40 = vpop.permute.xlu1 %625  ;;  %1143 = vmatmul.mubr.bf16.gmra.mrb[4].mxu1 %v1260_v37 }
  0x9e   :  { %1159 = vmatpush3.bf16.msra.mxu0 %v447_v39  ;;  %1175 = vmatpush3.bf16.msra.mxu1 %v618_v28 }
  0x9f   :  { %1176 = vmatprep.subr.bf16.mxu1 %v620_v30  ;;  %1186 = vmatprep.mubr.bf16.mxu1 %v1263_v38 }
  0xa0   :  { %v449_v41 = vpop.permute.xlu0 %448 }
  0xa1   :  { %1160 = vmatprep.subr.bf16.mxu0 %v449_v41  ;;  %v628_v42 = vpop.permute.xlu1 %627 }
  0xa2   :  { %1161 = vmatpush3.bf16.msra.mxu0 %v449_v41  ;;  %1177 = vmatpush3.bf16.msra.mxu1 %v620_v30 }
  0xa3   :  { %1178 = vmatprep.subr.bf16.mxu1 %v622_v34 }
  0xa4   :  { %v793_v44 = vpop.permute.xlu0 %792 }
  0xa5   :  { %1163 = vmatmul.mubr.bf16.vlgmr.msra.gmra.mrb[8].mxu0 %v1258_v43  ;;  %1194 = vmatprep.subr.bf16.mxu0 %v793_v44  ;;  %v795_v46 = vpop.permute.xlu1 %794 }
  0xa6   :  { %1179 = vmatpush3.bf16.msra.mxu1 %v622_v34  ;;  %1195 = vmatpush3.bf16.msra.mxu0 %v793_v44 }
  0xa7   :  { %1180 = vmatprep.subr.bf16.mxu1 %v624_v36  ;;  %1196 = vmatprep.subr.bf16.mxu0 %v795_v46 }
  0xa8   :  { %v797_v47 = vpop.permute.xlu0 %796  ;;  %1166 = vmatprep.mubr.bf16.mxu0 %v1261_v45 }
  0xa9   :  { %v799_v49 = vpop.permute.xlu1 %798 }
  0xaa   :  { %1181 = vmatpush3.bf16.msra.mxu1 %v624_v36  ;;  %1197 = vmatpush3.bf16.msra.mxu0 %v795_v46 }
  0xab   :  { %1182 = vmatprep.subr.bf16.mxu1 %v626_v40  ;;  %1198 = vmatprep.subr.bf16.mxu0 %v797_v47 }
  0xac   :  { %v801_v51 = vpop.permute.xlu0 %800 }
  0xad   :  { %1167 = vmatmul.mubr.bf16.gmra.mrb[12].mxu0 %v1262_v48  ;;  %v803_v53 = vpop.permute.xlu1 %802 }
  0xae   :  { %1183 = vmatpush3.bf16.msra.mxu1 %v626_v40  ;;  %1199 = vmatpush3.bf16.msra.mxu0 %v797_v47 }
  0xaf   :  { %1184 = vmatprep.subr.bf16.mxu1 %v628_v42  ;;  %1200 = vmatprep.subr.bf16.mxu0 %v799_v49 }
  0xb0   :  { %1210 = vmatprep.mubr.bf16.mxu0 %v1265_v50  ;;  %v805_v55 = vpop.permute.xlu0 %804 }
  0xb1   :  { %v807_v57 = vpop.permute.xlu1 %806 }
  0xb2   :  { %1185 = vmatpush3.bf16.msra.mxu1 %v628_v42  ;;  %1201 = vmatpush3.bf16.msra.mxu0 %v799_v49 }
  0xb3   :  { %1218 = vmatprep.subr.bf16.mxu1 %v793_v44  ;;  %1202 = vmatprep.subr.bf16.mxu0 %v801_v51 }
  0xb5   :  { %1187 = vmatmul.mubr.bf16.vlgmr.msra.gmra.mrb[8].mxu1 %v1264_v52 }
  0xb6   :  { %1226 = vmatpush3.bf16.msra.mxu1 %v793_v44  ;;  %1203 = vmatpush3.bf16.msra.mxu0 %v801_v51 }
  0xb7   :  { %1219 = vmatprep.subr.bf16.mxu1 %v795_v46  ;;  %1204 = vmatprep.subr.bf16.mxu0 %v803_v53 }
  0xb8   :  { %1190 = vmatprep.mubr.bf16.mxu1 %v1267_v54 }
  0xba   :  { %1227 = vmatpush3.bf16.msra.mxu1 %v795_v46  ;;  %1205 = vmatpush3.bf16.msra.mxu0 %v803_v53 }
  0xbb   :  { %1220 = vmatprep.subr.bf16.mxu1 %v797_v47  ;;  %1206 = vmatprep.subr.bf16.mxu0 %v805_v55 }
  0xbd   :  { %1191 = vmatmul.mubr.bf16.gmra.mrb[12].mxu1 %v1268_v56 }
  0xbe   :  { %1228 = vmatpush3.bf16.msra.mxu1 %v797_v47  ;;  %1207 = vmatpush3.bf16.msra.mxu0 %v805_v55 }
  0xbf   :  { %1221 = vmatprep.subr.bf16.mxu1 %v799_v49  ;;  %1208 = vmatprep.subr.bf16.mxu0 %v807_v57 }
  0xc0   :  { %1214 = vmatprep.mubr.bf16.mxu1 %v1269_v58 }
  0xc2   :  { %1229 = vmatpush3.bf16.msra.mxu1 %v799_v49  ;;  %1209 = vmatpush3.bf16.msra.mxu0 %v807_v57 }
  0xc3   :  { %1222 = vmatprep.subr.bf16.mxu1 %v801_v51 }
  0xc5   :  { %1211 = vmatmul.mubr.bf16.vlgmr.msra.gmra.mrb[16].mxu0 %v1266_v59 }
  0xc6   :  { %1230 = vmatpush3.bf16.msra.mxu1 %v801_v51 }
  0xc7   :  { %1223 = vmatprep.subr.bf16.mxu1 %v803_v53 }
  0xca   :  { %1231 = vmatpush3.bf16.msra.mxu1 %v803_v53 }
  0xcb   :  { %1224 = vmatprep.subr.bf16.mxu1 %v805_v55 }
  0xce   :  { %1232 = vmatpush3.bf16.msra.mxu1 %v805_v55 }
  0xcf   :  { %1225 = vmatprep.subr.bf16.mxu1 %v807_v57 }
  0xd2   :  { %1233 = vmatpush3.bf16.msra.mxu1 %v807_v57 }
  0xd5   :  { %1215 = vmatmul.mubr.bf16.vlgmr.msra.gmra.mrb[16].mxu1 %v1270_v60 }
  0xf5   :  { %v1116_v63 = vpop.f32.mrb[0].mxu0 }
  0xf6   :  { %v199_v1 = vadd.f32 %v1116_v63, %v46_v61  ;;  %v166_v2 = vpop.f32.mrb[1].mxu0 }
  0xf7   :  { %v197_v4 = vadd.f32 %v166_v2, %v44_v62  ;;  %v1117_v5 = vpop.f32.mrb[2].mxu0 }
  0xf8   :  { %208 = vst.msk [vmem:[#allocation2 + $0x10] sm:$0xff] %vm205_vm1, %v199_v1  ;;  %v200_v6 = vadd.f32 %v1117_v5, %v47_v0  ;;  %v169_v7 = vpop.f32.mrb[3].mxu0 }
  0xf9   :  { %206 = vst.msk [vmem:[#allocation2] sm:$0xff] %vm205_vm1, %v197_v4  ;;  %v198_v8 = vadd.f32 %v169_v7, %v45_v3 }
  0xfa   :  { %209 = vst.msk [vmem:[#allocation2 + $0x18] sm:$0xff] %vm205_vm1, %v200_v6 }
  0xfb   :  { %207 = vst.msk [vmem:[#allocation2 + $0x8] sm:$0xff] %vm205_vm1, %v198_v8 }
  0xfd   :  { %v1120_v11 = vpop.f32.mrb[4].mxu0 }
  0xfe   :  { %v203_v13 = vadd.f32 %v1120_v11, %v50_v9  ;;  %v182_v14 = vpop.f32.mrb[5].mxu0 }
  0xff   :  { %v201_v16 = vadd.f32 %v182_v14, %v48_v10  ;;  %v1121_v17 = vpop.f32.mrb[6].mxu0  ;;  %v216_v54 = vld [vmem:[#allocation2 + $0x10] sm:$0xff] }
 0x100   :  { %212 = vst.msk [vmem:[#allocation2 + $0x30] sm:$0xff] %vm205_vm1, %v203_v13  ;;  %v204_v18 = vadd.f32 %v1121_v17, %v51_v12  ;;  %v185_v19 = vpop.f32.mrb[7].mxu0  ;;  %v214_v1 = vld [vmem:[#allocation2] sm:$0xff] }
 0x101   :  { %210 = vst.msk [vmem:[#allocation2 + $0x20] sm:$0xff] %vm205_vm1, %v201_v16  ;;  %v202_v20 = vadd.f32 %v185_v19, %v49_v15  ;;  %v217_v57 = vld [vmem:[#allocation2 + $0x18] sm:$0xff] }
 0x102   :  { %213 = vst.msk [vmem:[#allocation2 + $0x38] sm:$0xff] %vm205_vm1, %v204_v18  ;;  %v215_v4 = vld [vmem:[#allocation2 + $0x8] sm:$0xff] }
 0x103   :  { %211 = vst.msk [vmem:[#allocation2 + $0x28] sm:$0xff] %vm205_vm1, %v202_v20 }
 0x107   :  { %v220_v9 = vld [vmem:[#allocation2 + $0x30] sm:$0xff] }
 0x109   :  { %v221_v13 = vld [vmem:[#allocation2 + $0x38] sm:$0xff] }
 0x168   :  { %v1140_v21 = vpop.f32.mrb[0].mxu1 }
 0x169   :  { %356 = vrot.lane.b32.xlu0 %v1140_v21, %s1276_s0  ;;  %v313_v22 = vpop.f32.mrb[1].mxu1  ;;  %v218_v21 = vld [vmem:[#allocation2 + $0x20] sm:$0xff] }
 0x16a   :  { %v1141_v23 = vpop.f32.mrb[2].mxu1 }
 0x16b   :  { %358 = vrot.lane.b32.xlu1 %v1141_v23, %s1276_s0  ;;  %v316_v24 = vpop.f32.mrb[3].mxu1 }
 0x170   :  { %v1144_v25 = vpop.f32.mrb[4].mxu1 }
 0x171   :  { %v329_v26 = vpop.f32.mrb[5].mxu1 }
 0x172   :  { %v1145_v27 = vpop.f32.mrb[6].mxu1 }
 0x173   :  { %v332_v28 = vpop.f32.mrb[7].mxu1 }
 0x178   :  { %v1164_v29 = vpop.f32.mrb[8].mxu0 }
 0x179   :  { %535 = vrot.lane.b32.xlu0 %v1164_v29, %s1277_s16  ;;  %v492_v30 = vpop.f32.mrb[9].mxu0 }
 0x17a   :  { %v1165_v31 = vpop.f32.mrb[10].mxu0 }
 0x17b   :  { %537 = vrot.lane.b32.xlu1 %v1165_v31, %s1277_s16  ;;  %v495_v32 = vpop.f32.mrb[11].mxu0 }
 0x17d   :  { %352 = vrot.lane.b32.xlu0 %v313_v22, %s1276_s0 }
 0x17f   :  { %354 = vrot.lane.b32.xlu1 %v316_v24, %s1276_s0 }
 0x180   :  { %v1168_v33 = vpop.f32.mrb[12].mxu0 }
 0x181   :  { %531 = vrot.lane.b32.xlu0 %v492_v30, %s1277_s16  ;;  %v508_v34 = vpop.f32.mrb[13].mxu0 }
 0x182   :  { %v1169_v35 = vpop.f32.mrb[14].mxu0 }
 0x183   :  { %533 = vrot.lane.b32.xlu1 %v495_v32, %s1277_s16  ;;  %v511_v36 = vpop.f32.mrb[15].mxu0 }
 0x185   :  { %364 = vrot.lane.b32.xlu0 %v1144_v25, %s1276_s0 }
 0x187   :  { %366 = vrot.lane.b32.xlu1 %v1145_v27, %s1276_s0 }
 0x188   :  { %v1188_v37 = vpop.f32.mrb[8].mxu1 }
 0x189   :  { %543 = vrot.lane.b32.xlu0 %v1168_v33, %s1277_s16  ;;  %v671_v38 = vpop.f32.mrb[9].mxu1 }
 0x18a   :  { %v1189_v39 = vpop.f32.mrb[10].mxu1 }
 0x18b   :  { %545 = vrot.lane.b32.xlu1 %v1169_v35, %s1277_s16  ;;  %v674_v40 = vpop.f32.mrb[11].mxu1 }
 0x18d   :  { %360 = vrot.lane.b32.xlu0 %v329_v26, %s1276_s0  ;;  %v219_v26 = vld [vmem:[#allocation2 + $0x28] sm:$0xff] }
 0x18f   :  { %362 = vrot.lane.b32.xlu1 %v332_v28, %s1276_s0 }
 0x190   :  { %v1192_v41 = vpop.f32.mrb[12].mxu1 }
 0x191   :  { %539 = vrot.lane.b32.xlu0 %v508_v34, %s1277_s16  ;;  %v687_v42 = vpop.f32.mrb[13].mxu1 }
 0x192   :  { %v1193_v43 = vpop.f32.mrb[14].mxu1 }
 0x193   :  { %541 = vrot.lane.b32.xlu1 %v511_v36, %s1277_s16  ;;  %v690_v44 = vpop.f32.mrb[15].mxu1 }
 0x195   :  { %714 = vrot.lane.b32.xlu0 %v1188_v37, %s1278_s17 }
 0x197   :  { %716 = vrot.lane.b32.xlu1 %v1189_v39, %s1278_s17 }
 0x198   :  { %v1212_v45 = vpop.f32.mrb[16].mxu0 }
 0x199   :  { %710 = vrot.lane.b32.xlu0 %v671_v38, %s1278_s17  ;;  %v850_v46 = vpop.f32.mrb[17].mxu0 }
 0x19a   :  { %v1213_v47 = vpop.f32.mrb[18].mxu0 }
 0x19b   :  { %712 = vrot.lane.b32.xlu1 %v674_v40, %s1278_s17  ;;  %v853_v48 = vpop.f32.mrb[19].mxu0 }
 0x19d   :  { %889 = vrot.lane.b32.xlu0 %v850_v46, %s1279_s18 }
 0x19f   :  { %891 = vrot.lane.b32.xlu1 %v853_v48, %s1279_s18 }
 0x1a1   :  { %722 = vrot.lane.b32.xlu0 %v1192_v41, %s1278_s17 }
 0x1a3   :  { %724 = vrot.lane.b32.xlu1 %v1193_v43, %s1278_s17 }
 0x1a5   :  { %718 = vrot.lane.b32.xlu0 %v687_v42, %s1278_s17 }
 0x1a7   :  { %720 = vrot.lane.b32.xlu1 %v690_v44, %s1278_s17 }
 0x1a8   :  { %v1216_v49 = vpop.f32.mrb[16].mxu1 }
 0x1a9   :  { %v866_v50 = vpop.f32.mrb[17].mxu1  ;;  %893 = vrot.lane.b32.xlu0 %v1212_v45, %s1279_s18 }
 0x1aa   :  { %v1217_v51 = vpop.f32.mrb[18].mxu1 }
 0x1ab   :  { %v869_v52 = vpop.f32.mrb[19].mxu1  ;;  %895 = vrot.lane.b32.xlu1 %v1213_v47, %s1279_s18 }
 0x1ad   :  { %897 = vrot.lane.b32.xlu0 %v866_v50, %s1279_s18 }
 0x1af   :  { %899 = vrot.lane.b32.xlu1 %v869_v52, %s1279_s18 }
 0x1b1   :  { %901 = vrot.lane.b32.xlu0 %v1216_v49, %s1279_s18 }
 0x1b3   :  { %903 = vrot.lane.b32.xlu1 %v1217_v51, %s1279_s18 }
 0x1db   :  { %v357_v53 = vpop.permute.xlu0 %356 }
 0x1dc   :  { %v378_v55 = vadd.f32 %v357_v53, %v216_v54 }
 0x1dd   :  { %v359_v56 = vpop.permute.xlu1 %358 }
 0x1de   :  { %387 = vst.msk [vmem:[#allocation2 + $0x10] sm:$0xff] %vm384_vm2, %v378_v55  ;;  %v379_v58 = vadd.f32 %v359_v56, %v217_v57 }
 0x1e0   :  { %388 = vst.msk [vmem:[#allocation2 + $0x18] sm:$0xff] %vm384_vm2, %v379_v58 }
 0x1e5   :  { %v395_v59 = vld [vmem:[#allocation2 + $0x10] sm:$0xff] }
 0x1e7   :  { %v396_v62 = vld [vmem:[#allocation2 + $0x18] sm:$0xff] }
 0x1eb   :  { %v536_v60 = vpop.permute.xlu0 %535 }
 0x1ec   :  { %v557_v61 = vadd.f32 %v536_v60, %v395_v59 }
 0x1ed   :  { %v538_v63 = vpop.permute.xlu1 %537 }
 0x1ee   :  { %566 = vst.msk [vmem:[#allocation2 + $0x10] sm:$0xff] %vm563_vm3, %v557_v61  ;;  %v558_v0 = vadd.f32 %v538_v63, %v396_v62 }
 0x1ef   :  { %v353_v2 = vpop.permute.xlu0 %352 }
 0x1f0   :  { %567 = vst.msk [vmem:[#allocation2 + $0x18] sm:$0xff] %vm563_vm3, %v558_v0  ;;  %v376_v3 = vadd.f32 %v353_v2, %v214_v1 }
 0x1f1   :  { %v355_v5 = vpop.permute.xlu1 %354 }
 0x1f2   :  { %385 = vst.msk [vmem:[#allocation2] sm:$0xff] %vm384_vm2, %v376_v3  ;;  %v377_v6 = vadd.f32 %v355_v5, %v215_v4 }
 0x1f3   :  { %v532_v7 = vpop.permute.xlu0 %531 }
 0x1f4   :  { %386 = vst.msk [vmem:[#allocation2 + $0x8] sm:$0xff] %vm384_vm2, %v377_v6 }
 0x1f5   :  { %v534_v8 = vpop.permute.xlu1 %533  ;;  %v574_v33 = vld [vmem:[#allocation2 + $0x10] sm:$0xff] }
 0x1f7   :  { %v365_v10 = vpop.permute.xlu0 %364  ;;  %v575_v37 = vld [vmem:[#allocation2 + $0x18] sm:$0xff] }
 0x1f8   :  { %v382_v11 = vadd.f32 %v365_v10, %v220_v9  ;;  %v1037_v9 = vld [vmem:[%s1509_s2] ss:$0 sm:$0xff] }
 0x1f9   :  { %v393_v12 = vld [vmem:[#allocation2] sm:$0xff]  ;;  %v367_v14 = vpop.permute.xlu1 %366 }
 0x1fa   :  { %v555_v15 = vadd.f32 %v532_v7, %v393_v12  ;;  %391 = vst.msk [vmem:[#allocation2 + $0x30] sm:$0xff] %vm384_vm2, %v382_v11  ;;  %v383_v16 = vadd.f32 %v367_v14, %v221_v13 }
 0x1fb   :  { %v394_v17 = vld [vmem:[#allocation2 + $0x8] sm:$0xff]  ;;  %v544_v18 = vpop.permute.xlu0 %543 }
 0x1fc   :  { %564 = vst.msk [vmem:[#allocation2] sm:$0xff] %vm563_vm3, %v555_v15  ;;  %v556_v19 = vadd.f32 %v534_v8, %v394_v17 }
 0x1fd   :  { %392 = vst.msk [vmem:[#allocation2 + $0x38] sm:$0xff] %vm384_vm2, %v383_v16  ;;  %v546_v20 = vpop.permute.xlu1 %545 }
 0x1fe   :  { %565 = vst.msk [vmem:[#allocation2 + $0x8] sm:$0xff] %vm563_vm3, %v556_v19 }
 0x1ff   :  { %v361_v22 = vpop.permute.xlu0 %360 }
 0x200   :  { %v380_v23 = vadd.f32 %v361_v22, %v218_v21 }
 0x201   :  { %v399_v24 = vld [vmem:[#allocation2 + $0x30] sm:$0xff]  ;;  %v363_v25 = vpop.permute.xlu1 %362 }
 0x202   :  { %v561_v27 = vadd.f32 %v544_v18, %v399_v24  ;;  %389 = vst.msk [vmem:[#allocation2 + $0x20] sm:$0xff] %vm384_vm2, %v380_v23  ;;  %v381_v28 = vadd.f32 %v363_v25, %v219_v26 }
 0x203   :  { %v540_v30 = vpop.permute.xlu0 %539  ;;  %v572_v42 = vld [vmem:[#allocation2] sm:$0xff] }
 0x204   :  { %v400_v29 = vld [vmem:[#allocation2 + $0x38] sm:$0xff]  ;;  %570 = vst.msk [vmem:[#allocation2 + $0x30] sm:$0xff] %vm563_vm3, %v561_v27 }
 0x205   :  { %v562_v31 = vadd.f32 %v546_v20, %v400_v29  ;;  %390 = vst.msk [vmem:[#allocation2 + $0x28] sm:$0xff] %vm384_vm2, %v381_v28  ;;  %v542_v32 = vpop.permute.xlu1 %541  ;;  %v573_v46 = vld [vmem:[#allocation2 + $0x8] sm:$0xff] }
 0x207   :  { %571 = vst.msk [vmem:[#allocation2 + $0x38] sm:$0xff] %vm563_vm3, %v562_v31  ;;  %v715_v34 = vpop.permute.xlu0 %714 }
 0x208   :  { %v736_v35 = vadd.f32 %v715_v34, %v574_v33 }
 0x209   :  { %v397_v36 = vld [vmem:[#allocation2 + $0x20] sm:$0xff]  ;;  %v717_v38 = vpop.permute.xlu1 %716 }
 0x20a   :  { %v559_v39 = vadd.f32 %v540_v30, %v397_v36  ;;  %745 = vst.msk [vmem:[#allocation2 + $0x10] sm:$0xff] %vm742_vm4, %v736_v35  ;;  %v737_v40 = vadd.f32 %v717_v38, %v575_v37 }
 0x20b   :  { %v711_v43 = vpop.permute.xlu0 %710  ;;  %v578_v51 = vld [vmem:[#allocation2 + $0x30] sm:$0xff] }
 0x20c   :  { %v398_v41 = vld [vmem:[#allocation2 + $0x28] sm:$0xff]  ;;  %568 = vst.msk [vmem:[#allocation2 + $0x20] sm:$0xff] %vm563_vm3, %v559_v39  ;;  %v734_v45 = vadd.f32 %v711_v43, %v572_v42 }
 0x20d   :  { %v560_v44 = vadd.f32 %v542_v32, %v398_v41  ;;  %746 = vst.msk [vmem:[#allocation2 + $0x18] sm:$0xff] %vm742_vm4, %v737_v40  ;;  %v713_v47 = vpop.permute.xlu1 %712 }
 0x20e   :  { %743 = vst.msk [vmem:[#allocation2] sm:$0xff] %vm742_vm4, %v734_v45  ;;  %v735_v48 = vadd.f32 %v713_v47, %v573_v46  ;;  %v579_v55 = vld [vmem:[#allocation2 + $0x38] sm:$0xff] }
 0x20f   :  { %569 = vst.msk [vmem:[#allocation2 + $0x28] sm:$0xff] %vm563_vm3, %v560_v44  ;;  %v890_v49 = vpop.permute.xlu0 %889 }
 0x210   :  { %744 = vst.msk [vmem:[#allocation2 + $0x8] sm:$0xff] %vm742_vm4, %v735_v48 }
 0x211   :  { %v892_v50 = vpop.permute.xlu1 %891  ;;  %v753_v3 = vld [vmem:[#allocation2 + $0x10] sm:$0xff] }
 0x213   :  { %v723_v52 = vpop.permute.xlu0 %722  ;;  %v576_v60 = vld [vmem:[#allocation2 + $0x20] sm:$0xff] }
 0x214   :  { %v740_v53 = vadd.f32 %v723_v52, %v578_v51  ;;  %v754_v6 = vld [vmem:[#allocation2 + $0x18] sm:$0xff] }
 0x215   :  { %v751_v54 = vld [vmem:[#allocation2] sm:$0xff]  ;;  %v725_v56 = vpop.permute.xlu1 %724 }
 0x216   :  { %v913_v57 = vadd.f32 %v890_v49, %v751_v54  ;;  %749 = vst.msk [vmem:[#allocation2 + $0x30] sm:$0xff] %vm742_vm4, %v740_v53  ;;  %v741_v58 = vadd.f32 %v725_v56, %v579_v55  ;;  %v577_v1 = vld [vmem:[#allocation2 + $0x28] sm:$0xff] }
 0x217   :  { %v752_v59 = vld [vmem:[#allocation2 + $0x8] sm:$0xff]  ;;  %v719_v61 = vpop.permute.xlu0 %718 }
 0x218   :  { %922 = vst.msk [vmem:[#allocation2] sm:$0xff] %vm921_vm5, %v913_v57  ;;  %v914_v62 = vadd.f32 %v892_v50, %v752_v59  ;;  %v738_v63 = vadd.f32 %v719_v61, %v576_v60 }
 0x219   :  { %750 = vst.msk [vmem:[#allocation2 + $0x38] sm:$0xff] %vm742_vm4, %v741_v58  ;;  %v721_v0 = vpop.permute.xlu1 %720 }
 0x21a   :  { %923 = vst.msk [vmem:[#allocation2 + $0x8] sm:$0xff] %vm921_vm5, %v914_v62  ;;  %v739_v2 = vadd.f32 %v721_v0, %v577_v1 }
 0x21b   :  { %747 = vst.msk [vmem:[#allocation2 + $0x20] sm:$0xff] %vm742_vm4, %v738_v63  ;;  %v894_v4 = vpop.permute.xlu0 %893 }
 0x21c   :  { %748 = vst.msk [vmem:[#allocation2 + $0x28] sm:$0xff] %vm742_vm4, %v739_v2  ;;  %v915_v5 = vadd.f32 %v894_v4, %v753_v3 }
 0x21d   :  { %v896_v7 = vpop.permute.xlu1 %895  ;;  %v757_v20 = vld [vmem:[#allocation2 + $0x30] sm:$0xff] }
 0x21e   :  { %924 = vst.msk [vmem:[#allocation2 + $0x10] sm:$0xff] %vm921_vm5, %v915_v5  ;;  %v916_v8 = vadd.f32 %v896_v7, %v754_v6 }
 0x21f   :  { %v933_v10 = vld [vmem:[#allocation2] sm:$0xff]  ;;  %v898_v11 = vpop.permute.xlu0 %897 }
 0x220   :  { %v941_v12 = vmax.f32 %v933_v10, 0.0  ;;  %925 = vst.msk [vmem:[#allocation2 + $0x18] sm:$0xff] %vm921_vm5, %v916_v8  ;;  %v758_v26 = vld [vmem:[#allocation2 + $0x38] sm:$0xff] }
 0x221   :  { %v934_v13 = vld [vmem:[#allocation2 + $0x8] sm:$0xff]  ;;  %v900_v15 = vpop.permute.xlu1 %899 }
 0x222   :  { %v755_v14 = vld [vmem:[#allocation2 + $0x20] sm:$0xff]  ;;  %v956_v16 = vadd.f32 %v1037_v9, %v941_v12  ;;  %v942_v17 = vmax.f32 %v934_v13, 0.0 }
 0x223   :  { %v917_v18 = vadd.f32 %v898_v11, %v755_v14  ;;  %v756_v19 = vld [vmem:[#allocation2 + $0x28] sm:$0xff]  ;;  %v902_v21 = vpop.permute.xlu0 %901 }
 0x224   :  { %965 = vst.msk [vmem:[%s1510_s3] sm:$0xff] %vm19_vm0, %v956_v16  ;;  %v957_v22 = vadd.f32 %v1037_v9, %v942_v17  ;;  %v918_v23 = vadd.f32 %v900_v15, %v756_v19  ;;  %v919_v24 = vadd.f32 %v902_v21, %v757_v20 }
 0x225   :  { %926 = vst.msk [vmem:[#allocation2 + $0x20] sm:$0xff] %vm921_vm5, %v917_v18  ;;  %v935_v25 = vld [vmem:[#allocation2 + $0x10] sm:$0xff]  ;;  %v904_v27 = vpop.permute.xlu1 %903 }
 0x226   :  { %966 = vst.msk [vmem:[%s1510_s3 + $0x8] sm:$0xff] %vm19_vm0, %v957_v22  ;;  %v943_v28 = vmax.f32 %v935_v25, 0.0  ;;  %v920_v29 = vadd.f32 %v904_v27, %v758_v26 }
 0x227   :  { %927 = vst.msk [vmem:[#allocation2 + $0x28] sm:$0xff] %vm921_vm5, %v918_v23  ;;  %928 = vst.msk [vmem:[#allocation2 + $0x30] sm:$0xff] %vm921_vm5, %v919_v24  ;;  %v936_v30 = vld [vmem:[#allocation2 + $0x18] sm:$0xff] }
 0x228   :  { %v958_v31 = vadd.f32 %v1037_v9, %v943_v28  ;;  %v944_v32 = vmax.f32 %v936_v30, 0.0  ;;  %929 = vst.msk [vmem:[#allocation2 + $0x38] sm:$0xff] %vm921_vm5, %v920_v29 }
 0x22a   :  { %967 = vst.msk [vmem:[%s1510_s3 + $0x10] sm:$0xff] %vm19_vm0, %v958_v31  ;;  %v959_v33 = vadd.f32 %v1037_v9, %v944_v32 }
 0x22c   :  { %v937_v34 = vld [vmem:[#allocation2 + $0x20] sm:$0xff]  ;;  %968 = vst.msk [vmem:[%s1510_s3 + $0x18] sm:$0xff] %vm19_vm0, %v959_v33 }
 0x22d   :  { %v945_v35 = vmax.f32 %v937_v34, 0.0 }
 0x22e   :  { %v938_v36 = vld [vmem:[#allocation2 + $0x28] sm:$0xff]  ;;  %v939_v37 = vld [vmem:[#allocation2 + $0x30] sm:$0xff] }
 0x22f   :  { %v960_v38 = vadd.f32 %v1037_v9, %v945_v35  ;;  %v946_v39 = vmax.f32 %v938_v36, 0.0  ;;  %v947_v40 = vmax.f32 %v939_v37, 0.0  ;;  %v940_v41 = vld [vmem:[#allocation2 + $0x38] sm:$0xff] }
 0x230   :  { %v948_v44 = vmax.f32 %v940_v41, 0.0 }
 0x231   :  { %969 = vst.msk [vmem:[%s1510_s3 + $0x20] sm:$0xff] %vm19_vm0, %v960_v38  ;;  %v961_v42 = vadd.f32 %v1037_v9, %v946_v39  ;;  %v962_v43 = vadd.f32 %v1037_v9, %v947_v40 }
 0x232   :  { %v963_v45 = vadd.f32 %v1037_v9, %v948_v44 }
 0x233   :  { %970 = vst.msk [vmem:[%s1510_s3 + $0x28] sm:$0xff] %vm19_vm0, %v961_v42  ;;  %971 = vst.msk [vmem:[%s1510_s3 + $0x30] sm:$0xff] %vm19_vm0, %v962_v43 }
 0x234   :  { %972 = vst.msk [vmem:[%s1510_s3 + $0x38] sm:$0xff] %vm19_vm0, %v963_v45 }

</bundles_post_ra>
